<compile_context>
chip_gen: v7x
topology: tpu7x:2x2x1
jax: 0.10.0
libtpu: 0.0.40
codegen_flags: <defaults>
</compile_context>

<pallas_src>
import jax
import jax.numpy as jnp
from jax.experimental import pallas as pl
from jax.experimental.pallas import tpu as pltpu

F32 = jnp.float32
BF16 = jnp.bfloat16


def _round_up(a, b):
    return (a + b - 1) // b * b


def _cdiv(a, b):
    return (a + b - 1) // b


# ----------------------------- weight placement -----------------------------
def _place_rows(src, nrows, row_map):
    out = jnp.zeros((nrows, src.shape[1]), F32)
    for dst, s, ln in row_map:
        out = out.at[dst:dst + ln, :].set(src[s:s + ln, :])
    return out


def _place_cols(src, ncols, col_map):
    out = jnp.zeros((src.shape[0], ncols), F32)
    for dst, s, ln in col_map:
        out = out.at[:, dst:dst + ln].set(src[:, s:s + ln])
    return out


def _place_vec(src, ncols, col_map):
    out = jnp.zeros((ncols,), F32)
    for dst, s, ln in col_map:
        out = out.at[dst:dst + ln].set(src[s:s + ln])
    return out


# --------------------------------- kernel -----------------------------------
def make_stemlp_kernel(num_sp, num_tm, num_en, w_plan, b_cols, slab):
    """One row-tile of M = B*N rows through the whole network.

    w_plan : list of (row_offset, rows, cols) static slices of the packed
             weight array, in consumption order (all 128-row aligned).
    b_cols : per-bias lane widths (bias i lives in row i of the bias pack).
    slab   : 128-padded width of each branch activation (ds / dt).
    """

    def kernel(x_ref, w_ref, b_ref, o_ref):
        wit = iter(w_plan)
        bit = iter(range(len(b_cols)))
        ball = b_ref[...]                       # tiny [NB, C] f32, loaded once

        def next_w():
            r0, nr, nc = next(wit)
            return w_ref[r0:r0 + nr, :nc]       # static, tile-aligned slice

        def next_b():
            i = next(bit)
            return ball[i:i + 1, :b_cols[i]]

        def mlp(v):
            # MultiLayerPerceptron (eval): v + fc2(relu(fc1(v))), lane-padded.
            w1, b1 = next_w(), next_b()
            w2, b2 = next_w(), next_b()
            h = jnp.maximum(
                jnp.dot(v.astype(BF16), w1, preferred_element_type=F32) + b1,
                0.0)
            return v + jnp.dot(h.astype(BF16), w2,
                               preferred_element_type=F32) + b2

        # Fused data-embedding + channel placement: one dot builds both branch
        # inputs  base = [ ds = (ts_emb|sp) | dt = (ts_emb|tem) ]  with each
        # branch zero-padded to a 128-lane slab (no concats, no masked lanes).
        g, bg = next_w(), next_b()
        base = jnp.dot(x_ref[...], g, preferred_element_type=F32) + bg
        ds = base[:, :slab]
        dt = base[:, slab:]

        for _ in range(num_sp):                 # data_spatial_encoder
            ds = mlp(ds)
        for _ in range(num_tm):                 # data_time_encoder
            dt = mlp(dt)

        hidden = jnp.concatenate([dt, ds], axis=-1)   # 128-aligned slabs
        for _ in range(num_en):                 # encoder
            hidden = mlp(hidden)

        wr, br = next_w(), next_b()             # regression_layer (lane-dense)
        out = jnp.dot(hidden.astype(BF16), wr, preferred_element_type=F32) + br
        o_ref[...] = out.astype(o_ref.dtype)

    return kernel


# -------------------------------- wrapper -----------------------------------
def stemlp_forward(history_data, lap_mx, params, cfg):
    B, L, N, _ = history_data.shape
    input_dim = cfg["input_dim"]
    nd = cfg["node_dim"]
    LP = cfg["lape_dim"]
    E = cfg["embed_dim"]
    output_len = cfg["output_len"]
    nA, nB, nC = cfg["num_layerA"], cfg["num_layerB"], cfg["num_layerC"]

    ND2 = 2 * nd                         # T_i_D + D_i_W embedding channels
    D_ts = L * input_dim
    Ds, Dt = E + LP, E + ND2             # spatial / temporal branch dims
    De = Dt + Ds                         # hidden_dim, cat order [dt, ds]
    hidS, hidT, hidE = int(Ds * 1.5), int(Dt * 1.5), int(De * 1.5)

    # 128-lane padded channel widths (free on MXU, removes masked vregs)
    BR = _round_up(max(Ds, Dt), 128)     # per-branch activation slab
    HS = _round_up(hidS, 128)
    HT = _round_up(hidT, 128)
    HE = _round_up(hidE, 128)
    OUT = _round_up(output_len, 128)
    XIN_W = _round_up(D_ts + LP + ND2, 128)

    # ---------------- glue: gathers / reshapes (no FLOPs) -------------------
    x = history_data[..., :input_dim]
    x_ts = jnp.transpose(x, (0, 2, 1, 3)).reshape(B * N, D_ts)

    tod, dow = cfg["time_of_day_size"], cfg["day_of_week_size"]
    tid_idx = jnp.clip((history_data[:, -1, :, 1] * tod).astype(jnp.int32),
                       0, tod - 1)
    diw_idx = jnp.clip((history_data[:, -1, :, 2] * dow).astype(jnp.int32),
                       0, dow - 1)
    tid_emb = params["time_in_day_emb"][tid_idx]            # [B, N, nd]
    diw_emb = params["day_in_week_emb"][diw_idx]            # [B, N, nd]
    tem = jnp.concatenate([tid_emb, diw_emb], axis=-1).reshape(B * N, ND2)

    # LaplacianPE is a pure reshape/broadcast of lap_mx (if_prenode path)
    sp = jnp.broadcast_to(lap_mx[None], (B, N, LP)).reshape(B * N, LP)

    # ------------- pack weights (torch [Cout,Cin] -> [Cin,Cout]) ------------
    def wT(w):
        return jnp.asarray(w, F32).T

    w_blocks, b_vecs = [], []

    def add(wmat, bvec):
        w_blocks.append(wmat)
        b_vecs.append(bvec)

    def add_mlp(lw, hid, din_pad, hid_pad, in_map):
        w1 = _place_cols(_place_rows(wT(lw["w1"]), din_pad, in_map),
                         hid_pad, [(0, 0, hid)])
        b1 = _place_vec(jnp.asarray(lw["b1"], F32), hid_pad, [(0, 0, hid)])
        w2 = _place_cols(_place_rows(wT(lw["w2"]), hid_pad, [(0, 0, hid)]),
                         din_pad, in_map)
        b2 = _place_vec(jnp.asarray(lw["b2"], F32), din_pad, in_map)
        add(w1, b1)
        add(w2, b2)

    # fused first layer: data-embedding conv + identity pass-through of sp/tem
    g = jnp.zeros((XIN_W, 2 * BR), F32)
    emb_wT = wT(params["emb_w"])                             # [D_ts, E]
    g = g.at[0:D_ts, 0:E].set(emb_wT)                        # ts_emb -> ds slab
    g = g.at[D_ts:D_ts + LP, E:E + LP].set(jnp.eye(LP, dtype=F32))
    g = g.at[0:D_ts, BR:BR + E].set(emb_wT)                  # ts_emb -> dt slab
    g = g.at[D_ts + LP:D_ts + LP + ND2,
             BR + E:BR + E + ND2].set(jnp.eye(ND2, dtype=F32))
    emb_b = jnp.asarray(params["emb_b"], F32)
    bg = jnp.zeros((2 * BR,), F32).at[0:E].set(emb_b).at[BR:BR + E].set(emb_b)
    add(g, bg)

    simple_s = [(0, 0, Ds)]
    simple_t = [(0, 0, Dt)]
    enc_map = [(0, 0, Dt), (BR, Dt, Ds)]     # hidden = cat([dt, ds]) scatter

    for lw in params["spatial_layers"]:
        add_mlp(lw, hidS, BR, HS, simple_s)
    for lw in params["time_layers"]:
        add_mlp(lw, hidT, BR, HT, simple_t)
    for lw in params["encoder_layers"]:
        add_mlp(lw, hidE, 2 * BR, HE, enc_map)

    w_reg = _place_cols(_place_rows(wT(params["reg_w"]), 2 * BR, enc_map),
                        OUT, [(0, 0, output_len)])
    b_reg = _place_vec(jnp.asarray(params["reg_b"], F32), OUT,
                       [(0, 0, output_len)])
    add(w_reg, b_reg)

    # single packed weight array (bf16) + single bias pack (f32)
    c_max = max(m.shape[1] for m in w_blocks)
    r_total = sum(m.shape[0] for m in w_blocks)
    w_all = jnp.zeros((r_total, c_max), BF16)
    w_plan, r = [], 0
    for m in w_blocks:
        nr, nc = m.shape
        w_all = w_all.at[r:r + nr, :nc].set(m.astype(BF16))
        w_plan.append((r, nr, nc))
        r += nr

    b_all = jnp.zeros((len(b_vecs), c_max), F32)
    b_cols = []
    for i, v in enumerate(b_vecs):
        b_all = b_all.at[i, :v.shape[0]].set(v)
        b_cols.append(int(v.shape[0]))

    # ---------------- tiling: few big row tiles, honest VMEM budget ---------
    M = B * N
    M8 = _round_up(M, 8)
    w_bytes = int(w_all.size) * 2
    b_bytes = int(b_all.size) * 4

    def vmem_est(tm):
        io = 2 * tm * XIN_W * 2 + 2 * tm * OUT * 2      # dbl-buffered bf16 I/O
        act_lanes = 6 * BR + HS + HT + HE + OUT         # generous live f32 set
        return io + 2 * (w_bytes + b_bytes) + tm * act_lanes * 6

    MAX_TILE = 2048                       # grid is a serial loop on v5e/v6e ->
    grid_m = max(1, _cdiv(M8, MAX_TILE))  # one/few big tiles; >=2 tiles (both
    tile_m = _round_up(_cdiv(M8, grid_m), 8)   # v7x cores) whenever M > 2048
    while vmem_est(tile_m) > (40 << 20) and tile_m > 256:
        grid_m += 1
        tile_m = _round_up(_cdiv(M8, grid_m), 8)
    M_pad = grid_m * tile_m
    vmem_limit = int(min(max(vmem_est(tile_m) * 5 // 4 + (2 << 20), 16 << 20),
                         48 << 20))

    # packed lane-dense bf16 input stream (rows written directly at padded size)
    X_in = jnp.zeros((M_pad, XIN_W), BF16)
    X_in = X_in.at[:M, 0:D_ts].set(x_ts.astype(BF16))
    X_in = X_in.at[:M, D_ts:D_ts + LP].set(sp.astype(BF16))
    X_in = X_in.at[:M, D_ts + LP:D_ts + LP + ND2].set(tem.astype(BF16))

    kernel = make_stemlp_kernel(nB, nA, nC, w_plan, b_cols, BR)
    out = pl.pallas_call(
        kernel,
        out_shape=jax.ShapeDtypeStruct((M_pad, OUT), BF16),
        grid=(grid_m,),
        in_specs=[pl.BlockSpec((tile_m, XIN_W), lambda i: (i, 0)),
                  pl.BlockSpec(w_all.shape, lambda i: (0, 0)),
                  pl.BlockSpec(b_all.shape, lambda i: (0, 0))],
        out_specs=pl.BlockSpec((tile_m, OUT), lambda i: (i, 0)),
        compiler_params=pltpu.CompilerParams(
            dimension_semantics=("parallel",),
            vmem_limit_bytes=vmem_limit),
    )(X_in, w_all, b_all)

    # rows -> NCHW prediction [B, output_len, N, 1]
    pred = out[:M, :output_len].astype(F32).reshape(B, N, output_len)
    return pred.transpose(0, 2, 1)[..., None]


# ----------------------------- synthetic params -----------------------------
def init_params(key, cfg):
    """Deterministic synthetic parameter init (shapes follow STEMLP.__init__)."""
    D_ts = cfg["input_len"] * cfg["input_dim"]
    E = cfg["embed_dim"]
    nd = cfg["node_dim"]
    lp = cfg["lape_dim"]

    Ds = E + lp                      # data_spatial_hidden_dim
    Dt = E + 2 * nd                  # data_time_hidden_dim (T_i_D + D_i_W)
    De = Ds + Dt                     # hidden_dim

    keys = iter(jax.random.split(key, 64))

    def w(shape, scale=0.1):
        return jax.random.normal(next(keys), shape, F32) * scale

    def mlp_layer(dim):
        hid = int(dim * 1.5)
        return {"w1": w((hid, dim)), "b1": w((hid,), 0.01),
                "w2": w((dim, hid)), "b2": w((dim,), 0.01)}

    params = {
        "time_in_day_emb": w((cfg["time_of_day_size"], nd)),
        "day_in_week_emb": w((cfg["day_of_week_size"], nd)),
        "emb_w": w((E, D_ts)), "emb_b": w((E,), 0.01),
        "spatial_layers": [mlp_layer(Ds) for _ in range(cfg["num_layerB"])],
        "time_layers": [mlp_layer(Dt) for _ in range(cfg["num_layerA"])],
        "encoder_layers": [mlp_layer(De) for _ in range(cfg["num_layerC"])],
        "reg_w": w((cfg["output_len"], De)),
        "reg_b": w((cfg["output_len"],), 0.01),
    }
    return params


if __name__ == "__main__":
    cfg = dict(
        num_nodes=16, node_dim=8, input_len=8, input_dim=1, embed_dim=32,
        output_len=8, num_layerA=1, num_layerB=1, num_layerC=2,
        lape_dim=8, adp_dim=4,
        time_of_day_size=288, day_of_week_size=7,
        time_of_tp2_size=2, time_of_tp3_size=4,
        if_T_i_D=True, if_D_i_W=True, if_T_i_TP2=False, if_T_i_TP3=False,
        if_prenode=True, if_adanode=False,
    )

    B, L, N = 2, cfg["input_len"], cfg["num_nodes"]

    key = jax.random.PRNGKey(0)
    k_data, k_tod, k_dow, k_lap, k_par = jax.random.split(key, 5)

    data = jax.random.normal(k_data, (B, L, N, 1), F32)
    tod = jax.random.uniform(k_tod, (B, L, N, 1), F32)    # in [0,1)
    dow = jax.random.uniform(k_dow, (B, L, N, 1), F32)    # in [0,1)
    history_data = jnp.concatenate([data, tod, dow], axis=-1)  # [B, L, N, 3]

    lap_mx = jax.random.normal(k_lap, (N, cfg["lape_dim"]), F32) * 0.1
    params = init_params(k_par, cfg)

    pred = stemlp_forward(history_data, lap_mx, params, cfg)
    pred = jax.block_until_ready(pred)
    assert pred.shape == (B, cfg["output_len"], N, 1), pred.shape
    assert jnp.all(jnp.isfinite(pred))
    print("KERNEL_OK")
</pallas_src>

<mosaic_0001>
module attributes {stable_mosaic.version = 11 : i64} {
  func.func @kernel(%arg0: i32, %arg1: memref<32x128xbf16, #tpu.memory_space<vmem>>, %arg2: memref<1920x256xbf16, #tpu.memory_space<vmem>>, %arg3: memref<10x256xf32, #tpu.memory_space<vmem>>, %arg4: memref<32x128xbf16, #tpu.memory_space<vmem>>) attributes {dimension_semantics = [#tpu.dimension_semantics<parallel>], iteration_bounds = array<i64: 1>, scalar_prefetch = 0 : i64, scratch_operands = 0 : i64, tpu.core_type = #tpu.core_type<tc>, window_params = [{transform_indices = @transform_0, window_bounds = array<i64: 32, 128>}, {pipeline_mode = #tpu.pipeline_mode<synchronous>, transform_indices = @transform_1, window_bounds = array<i64: 1920, 256>}, {pipeline_mode = #tpu.pipeline_mode<synchronous>, transform_indices = @transform_2, window_bounds = array<i64: 10, 256>}, {transform_indices = @transform_3, window_bounds = array<i64: 32, 128>}]} {
    %c0 = arith.constant 0 : index
    %c0_0 = arith.constant 0 : index
    %0 = vector.load %arg3[%c0, %c0_0] : memref<10x256xf32, #tpu.memory_space<vmem>>, vector<10x256xf32>
    %c0_1 = arith.constant 0 : index
    %c0_2 = arith.constant 0 : index
    %1 = vector.load %arg2[%c0_1, %c0_2] : memref<1920x256xbf16, #tpu.memory_space<vmem>>, vector<128x256xbf16>
    %2 = vector.extract_strided_slice %0 {offsets = [0, 0], sizes = [1, 256], strides = [1, 1]} : vector<10x256xf32> to vector<1x256xf32>
    %c0_3 = arith.constant 0 : index
    %c0_4 = arith.constant 0 : index
    %3 = vector.load %arg1[%c0_3, %c0_4] : memref<32x128xbf16, #tpu.memory_space<vmem>>, vector<32x128xbf16>
    %cst = arith.constant dense<0.000000e+00> : vector<32x256xf32>
    %4 = tpu.matmul %3, %1, %cst {dimension_numbers = #tpu.dot_dimension_numbers<[1], [0], [0], [1], [0, 0, 1, 1], [], []>} : vector<32x128xbf16>, vector<128x256xbf16>, vector<32x256xf32> -> vector<32x256xf32>
    %5 = vector.broadcast %2 : vector<1x256xf32> to vector<32x256xf32>
    %6 = arith.addf %4, %5 : vector<32x256xf32>
    %7 = vector.extract_strided_slice %6 {offsets = [0, 0], sizes = [32, 128], strides = [1, 1]} : vector<32x256xf32> to vector<32x128xf32>
    %8 = vector.extract_strided_slice %6 {offsets = [0, 128], sizes = [32, 128], strides = [1, 1]} : vector<32x256xf32> to vector<32x128xf32>
    %c128 = arith.constant 128 : index
    %c0_5 = arith.constant 0 : index
    %9 = vector.load %arg2[%c128, %c0_5] : memref<1920x256xbf16, #tpu.memory_space<vmem>>, vector<128x128xbf16>
    %10 = vector.extract_strided_slice %0 {offsets = [1, 0], sizes = [1, 128], strides = [1, 1]} : vector<10x256xf32> to vector<1x128xf32>
    %c256 = arith.constant 256 : index
    %c0_6 = arith.constant 0 : index
    %11 = vector.load %arg2[%c256, %c0_6] : memref<1920x256xbf16, #tpu.memory_space<vmem>>, vector<128x128xbf16>
    %12 = vector.extract_strided_slice %0 {offsets = [2, 0], sizes = [1, 128], strides = [1, 1]} : vector<10x256xf32> to vector<1x128xf32>
    %13 = arith.truncf %7 : vector<32x128xf32> to vector<32x128xbf16>
    %cst_7 = arith.constant dense<0.000000e+00> : vector<32x128xf32>
    %14 = tpu.matmul %13, %9, %cst_7 {dimension_numbers = #tpu.dot_dimension_numbers<[1], [0], [0], [1], [0, 0, 1, 1], [], []>} : vector<32x128xbf16>, vector<128x128xbf16>, vector<32x128xf32> -> vector<32x128xf32>
    %15 = vector.broadcast %10 : vector<1x128xf32> to vector<32x128xf32>
    %16 = arith.addf %14, %15 : vector<32x128xf32>
    %cst_8 = arith.constant 0.000000e+00 : f32
    %17 = vector.broadcast %cst_8 : f32 to vector<32x128xf32>
    %18 = arith.maximumf %16, %17 : vector<32x128xf32>
    %19 = arith.truncf %18 : vector<32x128xf32> to vector<32x128xbf16>
    %cst_9 = arith.constant dense<0.000000e+00> : vector<32x128xf32>
    %20 = tpu.matmul %19, %11, %cst_9 {dimension_numbers = #tpu.dot_dimension_numbers<[1], [0], [0], [1], [0, 0, 1, 1], [], []>} : vector<32x128xbf16>, vector<128x128xbf16>, vector<32x128xf32> -> vector<32x128xf32>
    %21 = arith.addf %7, %20 : vector<32x128xf32>
    %22 = vector.broadcast %12 : vector<1x128xf32> to vector<32x128xf32>
    %23 = arith.addf %21, %22 : vector<32x128xf32>
    %c384 = arith.constant 384 : index
    %c0_10 = arith.constant 0 : index
    %24 = vector.load %arg2[%c384, %c0_10] : memref<1920x256xbf16, #tpu.memory_space<vmem>>, vector<128x128xbf16>
    %25 = vector.extract_strided_slice %0 {offsets = [3, 0], sizes = [1, 128], strides = [1, 1]} : vector<10x256xf32> to vector<1x128xf32>
    %c512 = arith.constant 512 : index
    %c0_11 = arith.constant 0 : index
    %26 = vector.load %arg2[%c512, %c0_11] : memref<1920x256xbf16, #tpu.memory_space<vmem>>, vector<128x128xbf16>
    %27 = vector.extract_strided_slice %0 {offsets = [4, 0], sizes = [1, 128], strides = [1, 1]} : vector<10x256xf32> to vector<1x128xf32>
    %28 = arith.truncf %8 : vector<32x128xf32> to vector<32x128xbf16>
    %cst_12 = arith.constant dense<0.000000e+00> : vector<32x128xf32>
    %29 = tpu.matmul %28, %24, %cst_12 {dimension_numbers = #tpu.dot_dimension_numbers<[1], [0], [0], [1], [0, 0, 1, 1], [], []>} : vector<32x128xbf16>, vector<128x128xbf16>, vector<32x128xf32> -> vector<32x128xf32>
    %30 = vector.broadcast %25 : vector<1x128xf32> to vector<32x128xf32>
    %31 = arith.addf %29, %30 : vector<32x128xf32>
    %cst_13 = arith.constant 0.000000e+00 : f32
    %32 = vector.broadcast %cst_13 : f32 to vector<32x128xf32>
    %33 = arith.maximumf %31, %32 : vector<32x128xf32>
    %34 = arith.truncf %33 : vector<32x128xf32> to vector<32x128xbf16>
    %cst_14 = arith.constant dense<0.000000e+00> : vector<32x128xf32>
    %35 = tpu.matmul %34, %26, %cst_14 {dimension_numbers = #tpu.dot_dimension_numbers<[1], [0], [0], [1], [0, 0, 1, 1], [], []>} : vector<32x128xbf16>, vector<128x128xbf16>, vector<32x128xf32> -> vector<32x128xf32>
    %36 = arith.addf %8, %35 : vector<32x128xf32>
    %37 = vector.broadcast %27 : vector<1x128xf32> to vector<32x128xf32>
    %38 = arith.addf %36, %37 : vector<32x128xf32>
    %39 = tpu.concatenate %38, %23 in 1 : vector<32x128xf32>, vector<32x128xf32> -> vector<32x256xf32>
    %c640 = arith.constant 640 : index
    %c0_15 = arith.constant 0 : index
    %40 = vector.load %arg2[%c640, %c0_15] : memref<1920x256xbf16, #tpu.memory_space<vmem>>, vector<256x256xbf16>
    %41 = vector.extract_strided_slice %0 {offsets = [5, 0], sizes = [1, 256], strides = [1, 1]} : vector<10x256xf32> to vector<1x256xf32>
    %c896 = arith.constant 896 : index
    %c0_16 = arith.constant 0 : index
    %42 = vector.load %arg2[%c896, %c0_16] : memref<1920x256xbf16, #tpu.memory_space<vmem>>, vector<256x256xbf16>
    %43 = vector.extract_strided_slice %0 {offsets = [6, 0], sizes = [1, 256], strides = [1, 1]} : vector<10x256xf32> to vector<1x256xf32>
    %44 = arith.truncf %39 : vector<32x256xf32> to vector<32x256xbf16>
    %cst_17 = arith.constant dense<0.000000e+00> : vector<32x256xf32>
    %45 = tpu.matmul %44, %40, %cst_17 {dimension_numbers = #tpu.dot_dimension_numbers<[1], [0], [0], [1], [0, 0, 1, 1], [], []>} : vector<32x256xbf16>, vector<256x256xbf16>, vector<32x256xf32> -> vector<32x256xf32>
    %46 = vector.broadcast %41 : vector<1x256xf32> to vector<32x256xf32>
    %47 = arith.addf %45, %46 : vector<32x256xf32>
    %cst_18 = arith.constant 0.000000e+00 : f32
    %48 = vector.broadcast %cst_18 : f32 to vector<32x256xf32>
    %49 = arith.maximumf %47, %48 : vector<32x256xf32>
    %50 = arith.truncf %49 : vector<32x256xf32> to vector<32x256xbf16>
    %cst_19 = arith.constant dense<0.000000e+00> : vector<32x256xf32>
    %51 = tpu.matmul %50, %42, %cst_19 {dimension_numbers = #tpu.dot_dimension_numbers<[1], [0], [0], [1], [0, 0, 1, 1], [], []>} : vector<32x256xbf16>, vector<256x256xbf16>, vector<32x256xf32> -> vector<32x256xf32>
    %52 = arith.addf %39, %51 : vector<32x256xf32>
    %53 = vector.broadcast %43 : vector<1x256xf32> to vector<32x256xf32>
    %54 = arith.addf %52, %53 : vector<32x256xf32>
    %c1152 = arith.constant 1152 : index
    %c0_20 = arith.constant 0 : index
    %55 = vector.load %arg2[%c1152, %c0_20] : memref<1920x256xbf16, #tpu.memory_space<vmem>>, vector<256x256xbf16>
    %56 = vector.extract_strided_slice %0 {offsets = [7, 0], sizes = [1, 256], strides = [1, 1]} : vector<10x256xf32> to vector<1x256xf32>
    %c1408 = arith.constant 1408 : index
    %c0_21 = arith.constant 0 : index
    %57 = vector.load %arg2[%c1408, %c0_21] : memref<1920x256xbf16, #tpu.memory_space<vmem>>, vector<256x256xbf16>
    %58 = vector.extract_strided_slice %0 {offsets = [8, 0], sizes = [1, 256], strides = [1, 1]} : vector<10x256xf32> to vector<1x256xf32>
    %59 = arith.truncf %54 : vector<32x256xf32> to vector<32x256xbf16>
    %cst_22 = arith.constant dense<0.000000e+00> : vector<32x256xf32>
    %60 = tpu.matmul %59, %55, %cst_22 {dimension_numbers = #tpu.dot_dimension_numbers<[1], [0], [0], [1], [0, 0, 1, 1], [], []>} : vector<32x256xbf16>, vector<256x256xbf16>, vector<32x256xf32> -> vector<32x256xf32>
    %61 = vector.broadcast %56 : vector<1x256xf32> to vector<32x256xf32>
    %62 = arith.addf %60, %61 : vector<32x256xf32>
    %cst_23 = arith.constant 0.000000e+00 : f32
    %63 = vector.broadcast %cst_23 : f32 to vector<32x256xf32>
    %64 = arith.maximumf %62, %63 : vector<32x256xf32>
    %65 = arith.truncf %64 : vector<32x256xf32> to vector<32x256xbf16>
    %cst_24 = arith.constant dense<0.000000e+00> : vector<32x256xf32>
    %66 = tpu.matmul %65, %57, %cst_24 {dimension_numbers = #tpu.dot_dimension_numbers<[1], [0], [0], [1], [0, 0, 1, 1], [], []>} : vector<32x256xbf16>, vector<256x256xbf16>, vector<32x256xf32> -> vector<32x256xf32>
    %67 = arith.addf %54, %66 : vector<32x256xf32>
    %68 = vector.broadcast %58 : vector<1x256xf32> to vector<32x256xf32>
    %69 = arith.addf %67, %68 : vector<32x256xf32>
    %c1664 = arith.constant 1664 : index
    %c0_25 = arith.constant 0 : index
    %70 = vector.load %arg2[%c1664, %c0_25] : memref<1920x256xbf16, #tpu.memory_space<vmem>>, vector<256x128xbf16>
    %71 = vector.extract_strided_slice %0 {offsets = [9, 0], sizes = [1, 128], strides = [1, 1]} : vector<10x256xf32> to vector<1x128xf32>
    %72 = arith.truncf %69 : vector<32x256xf32> to vector<32x256xbf16>
    %cst_26 = arith.constant dense<0.000000e+00> : vector<32x128xf32>
    %73 = tpu.matmul %72, %70, %cst_26 {dimension_numbers = #tpu.dot_dimension_numbers<[1], [0], [0], [1], [0, 0, 1, 1], [], []>} : vector<32x256xbf16>, vector<256x128xbf16>, vector<32x128xf32> -> vector<32x128xf32>
    %74 = vector.broadcast %71 : vector<1x128xf32> to vector<32x128xf32>
    %75 = arith.addf %73, %74 : vector<32x128xf32>
    %76 = arith.truncf %75 : vector<32x128xf32> to vector<32x128xbf16>
    %c0_27 = arith.constant 0 : index
    %c0_28 = arith.constant 0 : index
    %77 = vector.load %arg4[%c0_27, %c0_28] : memref<32x128xbf16, #tpu.memory_space<vmem>>, vector<32x128xbf16>
    tpu.vector_store %arg4[%c0_27, %c0_28], %76 {strides = array<i32>} : memref<32x128xbf16, #tpu.memory_space<vmem>>, vector<32x128xbf16>,
    return
  }
  func.func @transform_0(%arg0: i32) -> (i32, i32) {
    %c0_i32 = arith.constant 0 : i32
    %c0_i32_0 = arith.constant 0 : i32
    return %arg0, %c0_i32 : i32, i32
  }
  func.func @transform_1(%arg0: i32) -> (i32, i32) {
    %c0_i32 = arith.constant 0 : i32
    %c0_i32_0 = arith.constant 0 : i32
    %c0_i32_1 = arith.constant 0 : i32
    return %c0_i32, %c0_i32_0 : i32, i32
  }
  func.func @transform_2(%arg0: i32) -> (i32, i32) {
    %c0_i32 = arith.constant 0 : i32
    %c0_i32_0 = arith.constant 0 : i32
    %c0_i32_1 = arith.constant 0 : i32
    return %c0_i32, %c0_i32_0 : i32, i32
  }
  func.func @transform_3(%arg0: i32) -> (i32, i32) {
    %c0_i32 = arith.constant 0 : i32
    %c0_i32_0 = arith.constant 0 : i32
    return %arg0, %c0_i32 : i32, i32
  }
}

</mosaic_0001>

<bundles_post_ra>
// kernel: tpu_custom_call.1
= control target key start
LH: loop header
LB: loop body
LE: loop exit
PB: predicated region body
PF: predicated region fallthrough
CT: control target
= control target key end

     0   :  { %8 = vsyncpa [#allocation3], 0  ;;  %s2982_s0 = inlined_call_operand.hbm [shape: bf16[32,128], index: 0, kind: input, shape index: {}]   ;;  %s2983_s1 = inlined_call_operand.hbm [shape: bf16[1920,256], index: 1, kind: input, shape index: {}]   ;;  %s2984_s2 = inlined_call_operand.hbm [shape: f32[10,256], index: 2, kind: input, shape index: {}]   ;;  %s2985_s3 = inlined_call_operand.hbm [shape: bf16[32,128], index: 3, kind: output, shape index: {}]  }
   0x1   :  { %9 = vsyncpa [#allocation6], 0 }
   0x2   :  { %10 = vsyncpa [#allocation4], 0  ;;  %s2765_s12 = smov [#allocation5]   ;;  %s2671_s16 = scalar_lea.hbm %s2983_s1, 30720 }
   0x3   :  { %s28_s13 = sshll.u32 %s2765_s12, 4  ;;  %p2672_p0 = scmp.ne.s32.totalorder %s2983_s1, %s2671_s16  ;;  %s29_s13 = int_to_ptr.vmem [resolvable:$true] %s28_s13 }
   0x4   :  { %p2675_p1 = scmp.lt.u32.totalorder %s2671_s16, %s2983_s1 }
   0x6   :  { %p2677_p2 = pnand %p2675_p1, %p2672_p0 }
   0x8   :  { %2680 = shalt.err (!%p2677_p2)
}
   0x9   :  { %s2681_s21 = scalar_lea.vmem %s29_s13, 30720  ;;  %p2686_p4 = scmp.lt.s32.totalorder %s29_s13, %s29_s13 }
   0xa   :  { %p2682_p3 = scmp.ne.s32.totalorder %s29_s13, %s2681_s21  ;;  %p2687_p5 = scmp.lt.s32.totalorder %s2681_s21, %s2681_s21 }
   0xc   :  { %p2688_p6 = por %p2687_p5, %p2686_p4 }
   0xe   :  { %p2689_p7 = pnand %p2688_p6, %p2682_p3 }
  0x10   :  { %2692 = shalt.err (!%p2689_p7)
}
  0x11   :  { %s2766_s22 = smov 128   ;;  %s2767_s23 = smov 8  }
  0x12   :  { %34 = dma.hbm_to_vmem [thread:$0]  %s2983_s1, 30720, %s29_s13, [#allocation6], %s2766_s22, %s2766_s22, %s2767_s23  }
  0x13   :  { %s2768_s26 = smov [#allocation2]   ;;  %s2693_s30 = scalar_lea.hbm %s2982_s0, 256 }
  0x14   :  { %s16_s27 = sshll.u32 %s2768_s26, 4  ;;  %p2694_p8 = scmp.ne.s32.totalorder %s2982_s0, %s2693_s30  ;;  %s17_s27 = int_to_ptr.vmem [resolvable:$true] %s16_s27 }
  0x15   :  { %p2697_p9 = scmp.lt.u32.totalorder %s2693_s30, %s2982_s0 }
  0x17   :  { %p2699_p10 = pnand %p2697_p9, %p2694_p8 }
  0x19   :  { %2702 = shalt.err (!%p2699_p10)
}
  0x1a   :  { %s2703_s8 = scalar_lea.vmem %s17_s27, 256  ;;  %p2708_p12 = scmp.lt.s32.totalorder %s17_s27, %s17_s27 }
  0x1b   :  { %p2704_p11 = scmp.ne.s32.totalorder %s17_s27, %s2703_s8  ;;  %p2709_p13 = scmp.lt.s32.totalorder %s2703_s8, %s2703_s8 }
  0x1d   :  { %p2710_p0 = por %p2709_p13, %p2708_p12 }
  0x1f   :  { %p2711_p1 = pnand %p2710_p0, %p2704_p11 }
  0x21   :  { %2714 = shalt.err (!%p2711_p1)
}
  0x22   :  { %s2769_s1 = smov 64   ;;  %s2770_s9 = smov 4  }
  0x23   :  { %22 = dma.hbm_to_vmem [thread:$0]  %s2982_s0, 256, %s17_s27, [#allocation3], %s2769_s1, %s2769_s1, %s2770_s9  }
  0x24   :  { %s2771_s12 = smov [#allocation7]   ;;  %s2715_s16 = scalar_lea.hbm %s2984_s2, 512 }
  0x25   :  { %s40_s13 = sshll.u32 %s2771_s12, 4  ;;  %p2716_p2 = scmp.ne.s32.totalorder %s2984_s2, %s2715_s16  ;;  %s41_s13 = int_to_ptr.vmem [resolvable:$true] %s40_s13 }
  0x26   :  { %p2719_p3 = scmp.lt.u32.totalorder %s2715_s16, %s2984_s2 }
  0x28   :  { %p2721_p4 = pnand %p2719_p3, %p2716_p2 }
  0x2a   :  { %2724 = shalt.err (!%p2721_p4)
}
  0x2b   :  { %s2725_s21 = scalar_lea.vmem %s41_s13, 512  ;;  %p2730_p6 = scmp.lt.s32.totalorder %s41_s13, %s41_s13 }
  0x2c   :  { %p2726_p5 = scmp.ne.s32.totalorder %s41_s13, %s2725_s21  ;;  %p2731_p7 = scmp.lt.s32.totalorder %s2725_s21, %s2725_s21 }
  0x2e   :  { %p2732_p8 = por %p2731_p7, %p2730_p6 }
  0x30   :  { %p2733_p9 = pnand %p2732_p8, %p2726_p5 }
  0x32   :  { %2736 = shalt.err (!%p2733_p9)
}
  0x33   :  { %s2772_s0 = smov 256   ;;  %s2773_s22 = smov 16  }
  0x34   :  { %46 = dma.hbm_to_vmem [thread:$0]  %s2984_s2, 512, %s41_s13, [#allocation6], %s2772_s0, %s2772_s0, %s2773_s22  }
  0x35   :  { %2759 = dma.done.wait [#allocation3], 256  }
  0x36   :  { %2760 = vsyncadd [#allocation3], 4294967040 }
  0x37   :  { %2761 = dma.done.wait [#allocation6], 31232  }
  0x38   :  { %2762 = vsyncadd [#allocation6], 4294936064  ;;  %v2774_v0 = vmov 0   ;;  %v2405_v1 = vld [vmem:[#allocation5 + $0x4] ss:$8 sps:$4 sm:$0xff]   ;;  %v2429_v22 = vld [vmem:[#allocation2] sm:$0xff]   ;;  %v81_v34 = vlaneseq }
  0x39   :  { %213 = vmatprep.mubr.bf16.mxu0 %v2774_v0  ;;  %v2407_v2 = vld [vmem:[#allocation5] ss:$8 sps:$4 sm:$0xff]   ;;  %181 = vmatprep.subr.bf16.mxu0 %v2405_v1  ;;  %v2408_v3 = vld [vmem:[#allocation5 + $0x14] ss:$8 sps:$4 sm:$0xff]   ;;  %v2410_v4 = vld [vmem:[#allocation5 + $0x10] ss:$8 sps:$4 sm:$0xff]  }
  0x3a   :  { %182 = vmatpush1.bf16.msra.mxu0 %v2407_v2  ;;  %v2411_v5 = vld [vmem:[#allocation5 + $0x24] ss:$8 sps:$4 sm:$0xff]   ;;  %v2413_v6 = vld [vmem:[#allocation5 + $0x20] ss:$8 sps:$4 sm:$0xff]   ;;  %v2414_v7 = vld [vmem:[#allocation5 + $0x34] ss:$8 sps:$4 sm:$0xff]  }
  0x3b   :  { %183 = vmatprep.subr.bf16.mxu0 %v2408_v3  ;;  %v2416_v8 = vld [vmem:[#allocation5 + $0x30] ss:$8 sps:$4 sm:$0xff]   ;;  %v2417_v9 = vld [vmem:[#allocation5 + $0x44] ss:$8 sps:$4 sm:$0xff]   ;;  %v2431_v10 = vld [vmem:[#allocation5 + $0x80] ss:$8 sps:$4 sm:$0xff]  }
  0x3c   :  { %v2432_v11 = vld [vmem:[#allocation5 + $0x90] ss:$8 sps:$4 sm:$0xff]   ;;  %v2419_v12 = vld [vmem:[#allocation5 + $0x40] ss:$8 sps:$4 sm:$0xff]   ;;  %2314 = vmatprep.subr.bf16.mxu1 %v2431_v10  ;;  %v2420_v13 = vld [vmem:[#allocation5 + $0x54] ss:$8 sps:$4 sm:$0xff]  }
  0x3d   :  { %2315 = vmatpush3.bf16.msra.mxu1 %v2431_v10  ;;  %v2422_v14 = vld [vmem:[#allocation5 + $0x50] ss:$8 sps:$4 sm:$0xff]   ;;  %v2433_v15 = vld [vmem:[#allocation5 + $0xa0] ss:$8 sps:$4 sm:$0xff]   ;;  %v2423_v16 = vld [vmem:[#allocation5 + $0x64] ss:$8 sps:$4 sm:$0xff]  }
  0x3e   :  { %184 = vmatpush1.bf16.msra.mxu0 %v2410_v4  ;;  %2316 = vmatprep.subr.bf16.mxu1 %v2432_v11  ;;  %v2434_v17 = vld [vmem:[#allocation5 + $0xb0] ss:$8 sps:$4 sm:$0xff]   ;;  %v2425_v18 = vld [vmem:[#allocation5 + $0x60] ss:$8 sps:$4 sm:$0xff]   ;;  %v2426_v19 = vld [vmem:[#allocation5 + $0x74] ss:$8 sps:$4 sm:$0xff]  }
  0x3f   :  { %185 = vmatprep.subr.bf16.mxu0 %v2411_v5  ;;  %v2435_v20 = vld [vmem:[#allocation5 + $0xc0] ss:$8 sps:$4 sm:$0xff]   ;;  %v2428_v21 = vld [vmem:[#allocation5 + $0x70] ss:$8 sps:$4 sm:$0xff]   ;;  %v2835_v35 = vshrl.u32 %v81_v34, 7  ;;  %s2775_s2 = smov [#allocation8]  }
  0x40   :  { %v2430_v23 = vld [vmem:[#allocation2 + $0x8] sm:$0xff]   ;;  %v2437_v25 = vld [vmem:[#allocation5 + $0xe0] ss:$8 sps:$4 sm:$0xff]   ;;  %s2020_s25 = sshll.u32 %s2775_s2, 4  ;;  %s2021_s25 = int_to_ptr.vmem [resolvable:$true] %s2020_s25 }
  0x41   :  { %2317 = vmatpush3.bf16.msra.mxu1 %v2432_v11  ;;  %v2436_v24 = vld [vmem:[#allocation5 + $0xd0] ss:$8 sps:$4 sm:$0xff]   ;;  %v2439_v27 = vld [vmem:[#allocation5 + $0x180] ss:$8 sps:$4 sm:$0xff]   ;;  %v2838_v36 = vsub.s32 0, %v2835_v35  ;;  %s2737_s26 = scalar_lea.vmem %s2021_s25, 256  ;;  %p2742_p11 = scmp.lt.s32.totalorder %s2021_s25, %s2021_s25 }
  0x42   :  { %186 = vmatpush1.bf16.msra.mxu0 %v2413_v6  ;;  %2318 = vmatprep.subr.bf16.mxu1 %v2433_v15  ;;  %v2438_v26 = vld [vmem:[#allocation5 + $0xf0] ss:$8 sps:$4 sm:$0xff]   ;;  %v2447_v28 = vld [vmem:[#allocation5 + $0x100] ss:$8 sps:$4 sm:$0xff]   ;;  %v2471_v11 = vld [vmem:[#allocation5 + $0x2a4] ss:$8 sps:$4 sm:$0xff]   ;;  %p2738_p10 = scmp.ne.s32.totalorder %s2021_s25, %s2737_s26  ;;  %p2743_p12 = scmp.lt.s32.totalorder %s2737_s26, %s2737_s26 }
  0x43   :  { %187 = vmatprep.subr.bf16.mxu0 %v2414_v7  ;;  %v2448_v29 = vld [vmem:[#allocation5 + $0x110] ss:$8 sps:$4 sm:$0xff]   ;;  %v2449_v30 = vld [vmem:[#allocation5 + $0x120] ss:$8 sps:$4 sm:$0xff]  }
  0x44   :  { %v2450_v31 = vld [vmem:[#allocation5 + $0x130] ss:$8 sps:$4 sm:$0xff]   ;;  %v2451_v32 = vld [vmem:[#allocation5 + $0x140] ss:$8 sps:$4 sm:$0xff]   ;;  %p2744_p13 = por %p2743_p12, %p2742_p11 }
  0x45   :  { %2319 = vmatpush3.bf16.msra.mxu1 %v2433_v15  ;;  %v2452_v33 = vld [vmem:[#allocation5 + $0x150] ss:$8 sps:$4 sm:$0xff]   ;;  %v2840_v37 = vld [vmem:[#allocation7] sm:$0xff]  ;;  %v2848_v45 = vld [vmem:[#allocation7 + $0x8] sm:$0xff] }
  0x46   :  { %188 = vmatpush1.bf16.msra.mxu0 %v2416_v8  ;;  %2320 = vmatprep.subr.bf16.mxu1 %v2434_v17  ;;  %v84_v38 = vrot.slane %v2840_v37, %v2838_v36  ;;  %v88_v47 = vrot.slane %v2848_v45, %v2838_v36  ;;  %v2440_v57 = vld [vmem:[#allocation5 + $0x190] ss:$8 sps:$4 sm:$0xff]   ;;  %v2441_v59 = vld [vmem:[#allocation5 + $0x1a0] ss:$8 sps:$4 sm:$0xff]   ;;  %v2465_v8 = vld [vmem:[#allocation5 + $0x284] ss:$8 sps:$4 sm:$0xff]   ;;  %p2745_p0 = pnand %p2744_p13, %p2738_p10 }
  0x47   :  { %189 = vmatprep.subr.bf16.mxu0 %v2417_v9  ;;  %v2442_v60 = vld [vmem:[#allocation5 + $0x1b0] ss:$8 sps:$4 sm:$0xff]   ;;  %v2443_v61 = vld [vmem:[#allocation5 + $0x1c0] ss:$8 sps:$4 sm:$0xff]   ;;  %v2468_v9 = vld [vmem:[#allocation5 + $0x294] ss:$8 sps:$4 sm:$0xff]  }
  0x48   :  { %v2444_v62 = vld [vmem:[#allocation5 + $0x1d0] ss:$8 sps:$4 sm:$0xff]   ;;  %v2445_v63 = vld [vmem:[#allocation5 + $0x1e0] ss:$8 sps:$4 sm:$0xff]   ;;  %v2477_v15 = vld [vmem:[#allocation5 + $0x2c4] ss:$8 sps:$4 sm:$0xff]  }
  0x49   :  { %2321 = vmatpush3.bf16.msra.mxu1 %v2434_v17  ;;  %v2453_v4 = vld [vmem:[#allocation5 + $0x160] ss:$8 sps:$4 sm:$0xff]   ;;  %v2454_v5 = vld [vmem:[#allocation5 + $0x170] ss:$8 sps:$4 sm:$0xff]   ;;  %v2480_v17 = vld [vmem:[#allocation5 + $0x2d4] ss:$8 sps:$4 sm:$0xff]  }
  0x4a   :  { %190 = vmatpush1.bf16.msra.mxu0 %v2419_v12  ;;  %2322 = vmatprep.subr.bf16.mxu1 %v2435_v20  ;;  %v2455_v6 = vld [vmem:[#allocation5 + $0x200] ss:$8 sps:$4 sm:$0xff]   ;;  %v2466_v10 = vld [vmem:[#allocation5 + $0x290] ss:$8 sps:$4 sm:$0xff]  }
  0x4b   :  { %191 = vmatprep.subr.bf16.mxu0 %v2420_v13  ;;  %v2463_v7 = vld [vmem:[#allocation5 + $0x280] ss:$8 sps:$4 sm:$0xff]   ;;  %v2474_v13 = vld [vmem:[#allocation5 + $0x2b4] ss:$8 sps:$4 sm:$0xff]  }
  0x4c   :  { %v2469_v12 = vld [vmem:[#allocation5 + $0x2a0] ss:$8 sps:$4 sm:$0xff]  }
  0x4d   :  { %2323 = vmatpush3.bf16.msra.mxu1 %v2435_v20 }
  0x4e   :  { %192 = vmatpush1.bf16.msra.mxu0 %v2422_v14  ;;  %2324 = vmatprep.subr.bf16.mxu1 %v2436_v24  ;;  %v2472_v14 = vld [vmem:[#allocation5 + $0x2b0] ss:$8 sps:$4 sm:$0xff]  }
  0x4f   :  { %193 = vmatprep.subr.bf16.mxu0 %v2423_v16  ;;  %v2475_v16 = vld [vmem:[#allocation5 + $0x2c0] ss:$8 sps:$4 sm:$0xff]  }
  0x51   :  { %2325 = vmatpush3.bf16.msra.mxu1 %v2436_v24 }
  0x52   :  { %194 = vmatpush1.bf16.msra.mxu0 %v2425_v18  ;;  %2326 = vmatprep.subr.bf16.mxu1 %v2437_v25  ;;  %v2478_v18 = vld [vmem:[#allocation5 + $0x2d0] ss:$8 sps:$4 sm:$0xff]  }
  0x53   :  { %195 = vmatprep.subr.bf16.mxu0 %v2426_v19  ;;  %v270_v19 = vsub.s32 1, %v2835_v35 }
  0x55   :  { %2327 = vmatpush3.bf16.msra.mxu1 %v2437_v25  ;;  %v271_v20 = vrot.slane %v2840_v37, %v270_v19 }
  0x56   :  { %196 = vmatpush1.bf16.msra.mxu0 %v2428_v21  ;;  %2328 = vmatprep.subr.bf16.mxu1 %v2438_v26 }
  0x57   :  { %2334 = vmatprep.subr.bf16.mxu0 %v2447_v28 }
  0x59   :  { %214 = vmatmul.mubr.bf16.vlgmr.msra.gmra.mrb[0].mxu0 %v2429_v22  ;;  %2329 = vmatpush3.bf16.msra.mxu1 %v2438_v26 }
  0x5a   :  { %223 = vmatprep.mubr.bf16.mxu0 %v2774_v0  ;;  %2354 = vmatprep.subr.bf16.mxu1 %v2439_v27  ;;  %v2446_v0 = vld [vmem:[#allocation5 + $0x1f0] ss:$8 sps:$4 sm:$0xff]  }
  0x5b   :  { %2335 = vmatpush3.bf16.msra.mxu0 %v2447_v28 }
  0x5c   :  { %2336 = vmatprep.subr.bf16.mxu0 %v2448_v29 }
  0x5f   :  { %2337 = vmatpush3.bf16.msra.mxu0 %v2448_v29 }
  0x60   :  { %2338 = vmatprep.subr.bf16.mxu0 %v2449_v30 }
  0x61   :  { %224 = vmatmul.mubr.bf16.gmra.mrb[4].mxu0 %v2430_v23 }
  0x63   :  { %2339 = vmatpush3.bf16.msra.mxu0 %v2449_v30 }
  0x64   :  { %2340 = vmatprep.subr.bf16.mxu0 %v2450_v31 }
  0x67   :  { %2341 = vmatpush3.bf16.msra.mxu0 %v2450_v31 }
  0x68   :  { %2342 = vmatprep.subr.bf16.mxu0 %v2451_v32 }
  0x6b   :  { %2343 = vmatpush3.bf16.msra.mxu0 %v2451_v32 }
  0x6c   :  { %2344 = vmatprep.subr.bf16.mxu0 %v2452_v33 }
  0x6f   :  { %2345 = vmatpush3.bf16.msra.mxu0 %v2452_v33 }
  0x70   :  { %2346 = vmatprep.subr.bf16.mxu0 %v2453_v4 }
  0x73   :  { %2347 = vmatpush3.bf16.msra.mxu0 %v2453_v4 }
  0x74   :  { %2348 = vmatprep.subr.bf16.mxu0 %v2454_v5 }
  0x77   :  { %2349 = vmatpush3.bf16.msra.mxu0 %v2454_v5 }
  0x78   :  { %2374 = vmatprep.subr.bf16.mxu0 %v2455_v6 }
 0x12c   :  { %v215_v39 = vpop.f32.mrb[0].mxu0 }
 0x12d   :  { %v217_v40 = vpop.f32.mrb[1].mxu0  ;;  %v2844_v42 = vadd.f32 %v215_v39, %v84_v38  ;;  %v2457_v39 = vld [vmem:[#allocation5 + $0x220] ss:$8 sps:$4 sm:$0xff]  }
 0x12e   :  { %v219_v41 = vpop.f32.mrb[2].mxu0  ;;  %v2860_v55 = vadd.f32 %v217_v40, %v88_v47  ;;  %v2458_v40 = vld [vmem:[#allocation5 + $0x230] ss:$8 sps:$4 sm:$0xff]  }
 0x12f   :  { %v2846_v43 = vadd.f32 %v219_v41, %v84_v38  ;;  %v221_v44 = vpop.f32.mrb[3].mxu0  ;;  %v2459_v41 = vld [vmem:[#allocation5 + $0x240] ss:$8 sps:$4 sm:$0xff]  }
 0x130   :  { %v2854_v50 = vadd.f32 %v221_v44, %v88_v47  ;;  %v2460_v44 = vld [vmem:[#allocation5 + $0x250] ss:$8 sps:$4 sm:$0xff]  }
 0x131   :  { %v266_v46 = vpack.c.bf16 %v2846_v43, %v2844_v42 }
 0x132   :  { %v516_v58 = vpack.c.bf16 %v2854_v50, %v2860_v55 }
 0x133   :  { %2330 = vmatprep.mubr.bf16.mxu1 %v266_v46  ;;  %v520_v46 = vsub.s32 3, %v2835_v35 }
 0x134   :  { %v225_v48 = vpop.f32.mrb[4].mxu0 }
 0x135   :  { %v227_v49 = vpop.f32.mrb[5].mxu0  ;;  %v2856_v52 = vadd.f32 %v225_v48, %v84_v38  ;;  %v2461_v48 = vld [vmem:[#allocation5 + $0x260] ss:$8 sps:$4 sm:$0xff]  }
 0x136   :  { %v229_v51 = vpop.f32.mrb[6].mxu0  ;;  %v2868_v2 = vadd.f32 %v227_v49, %v88_v47 }
 0x137   :  { %v2858_v53 = vadd.f32 %v229_v51, %v84_v38  ;;  %v231_v54 = vpop.f32.mrb[7].mxu0  ;;  %v2456_v38 = vld [vmem:[#allocation5 + $0x210] ss:$8 sps:$4 sm:$0xff]  }
 0x138   :  { %v2866_v1 = vadd.f32 %v231_v54, %v88_v47  ;;  %v521_v47 = vrot.slane %v2840_v37, %v520_v46  ;;  %v2529_v46 = vld [vmem:[#allocation5 + $0x3e0] ss:$8 sps:$4 sm:$0xff]  }
 0x139   :  { %v267_v56 = vpack.c.bf16 %v2858_v53, %v2856_v52 }
 0x13a   :  { %v517_v3 = vpack.c.bf16 %v2866_v1, %v2868_v2 }
 0x13b   :  { %2331 = vmatmul.mubr.bf16.vlgmr.msra.gmra.mrb[0].mxu1 %v267_v56  ;;  %v2462_v56 = vld [vmem:[#allocation5 + $0x270] ss:$8 sps:$4 sm:$0xff]  }
 0x13c   :  { %2355 = vmatpush3.bf16.msra.mxu1 %v2439_v27  ;;  %2370 = vmatprep.mubr.bf16.mxu1 %v516_v58 }
 0x13d   :  { %2356 = vmatprep.subr.bf16.mxu1 %v2440_v57 }
 0x140   :  { %2357 = vmatpush3.bf16.msra.mxu1 %v2440_v57 }
 0x141   :  { %2358 = vmatprep.subr.bf16.mxu1 %v2441_v59 }
 0x144   :  { %2359 = vmatpush3.bf16.msra.mxu1 %v2441_v59 }
 0x145   :  { %2360 = vmatprep.subr.bf16.mxu1 %v2442_v60 }
 0x148   :  { %2361 = vmatpush3.bf16.msra.mxu1 %v2442_v60 }
 0x149   :  { %2362 = vmatprep.subr.bf16.mxu1 %v2443_v61 }
 0x14c   :  { %2363 = vmatpush3.bf16.msra.mxu1 %v2443_v61 }
 0x14d   :  { %2364 = vmatprep.subr.bf16.mxu1 %v2444_v62 }
 0x150   :  { %2365 = vmatpush3.bf16.msra.mxu1 %v2444_v62 }
 0x151   :  { %2366 = vmatprep.subr.bf16.mxu1 %v2445_v63 }
 0x154   :  { %2367 = vmatpush3.bf16.msra.mxu1 %v2445_v63 }
 0x155   :  { %2368 = vmatprep.subr.bf16.mxu1 %v2446_v0 }
 0x158   :  { %2369 = vmatpush3.bf16.msra.mxu1 %v2446_v0 }
 0x159   :  { %970 = vmatprep.subr.bf16.mxu1 %v2465_v8  ;;  %v2486_v8 = vld [vmem:[#allocation5 + $0x2f4] ss:$8 sps:$4 sm:$0xff]  }
 0x15b   :  { %2371 = vmatmul.mubr.bf16.vlgmr.msra.gmra.mrb[4].mxu1 %v517_v3 }
 0x15c   :  { %971 = vmatpush1.bf16.msra.mxu1 %v2463_v7  ;;  %v2481_v7 = vld [vmem:[#allocation5 + $0x2e0] ss:$8 sps:$4 sm:$0xff]  }
 0x15d   :  { %972 = vmatprep.subr.bf16.mxu1 %v2468_v9  ;;  %v2484_v9 = vld [vmem:[#allocation5 + $0x2f0] ss:$8 sps:$4 sm:$0xff]  }
 0x160   :  { %973 = vmatpush1.bf16.msra.mxu1 %v2466_v10  ;;  %v2489_v10 = vld [vmem:[#allocation5 + $0x304] ss:$8 sps:$4 sm:$0xff]  }
 0x161   :  { %974 = vmatprep.subr.bf16.mxu1 %v2471_v11  ;;  %v2487_v11 = vld [vmem:[#allocation5 + $0x300] ss:$8 sps:$4 sm:$0xff]  }
 0x164   :  { %975 = vmatpush1.bf16.msra.mxu1 %v2469_v12  ;;  %v2492_v12 = vld [vmem:[#allocation5 + $0x314] ss:$8 sps:$4 sm:$0xff]  }
 0x165   :  { %976 = vmatprep.subr.bf16.mxu1 %v2474_v13  ;;  %v2490_v13 = vld [vmem:[#allocation5 + $0x310] ss:$8 sps:$4 sm:$0xff]  }
 0x168   :  { %977 = vmatpush1.bf16.msra.mxu1 %v2472_v14  ;;  %v2495_v14 = vld [vmem:[#allocation5 + $0x324] ss:$8 sps:$4 sm:$0xff]  }
 0x169   :  { %978 = vmatprep.subr.bf16.mxu1 %v2477_v15  ;;  %v2493_v15 = vld [vmem:[#allocation5 + $0x320] ss:$8 sps:$4 sm:$0xff]  }
 0x16c   :  { %979 = vmatpush1.bf16.msra.mxu1 %v2475_v16  ;;  %v2498_v16 = vld [vmem:[#allocation5 + $0x334] ss:$8 sps:$4 sm:$0xff]  }
 0x16d   :  { %980 = vmatprep.subr.bf16.mxu1 %v2480_v17  ;;  %v2496_v17 = vld [vmem:[#allocation5 + $0x330] ss:$8 sps:$4 sm:$0xff]  }
 0x170   :  { %981 = vmatpush1.bf16.msra.mxu1 %v2478_v18  ;;  %v2501_v18 = vld [vmem:[#allocation5 + $0x344] ss:$8 sps:$4 sm:$0xff]  }
 0x20e   :  { %v2332_v21 = vpop.f32.mrb[0].mxu1 }
 0x20f   :  { %v363_v22 = vadd.f32 %v2332_v21, %v271_v20  ;;  %v354_v23 = vpop.f32.mrb[1].mxu1  ;;  %v2504_v21 = vld [vmem:[#allocation5 + $0x354] ss:$8 sps:$4 sm:$0xff]  }
 0x210   :  { %v355_v24 = vadd.f32 %v354_v23, %v271_v20  ;;  %v2333_v25 = vpop.f32.mrb[2].mxu1  ;;  %v2507_v23 = vld [vmem:[#allocation5 + $0x364] ss:$8 sps:$4 sm:$0xff]  }
 0x211   :  { %v366_v26 = vadd.f32 %v2333_v25, %v271_v20  ;;  %v357_v27 = vpop.f32.mrb[3].mxu1  ;;  %v371_v29 = vmax.f32 %v363_v22, 0.0  ;;  %v2502_v22 = vld [vmem:[#allocation5 + $0x350] ss:$8 sps:$4 sm:$0xff]   ;;  %v2510_v25 = vld [vmem:[#allocation5 + $0x374] ss:$8 sps:$4 sm:$0xff]  }
 0x212   :  { %v358_v28 = vadd.f32 %v357_v27, %v271_v20  ;;  %v369_v31 = vmax.f32 %v355_v24, 0.0  ;;  %v2499_v20 = vld [vmem:[#allocation5 + $0x340] ss:$8 sps:$4 sm:$0xff]  }
 0x213   :  { %v372_v30 = vmax.f32 %v366_v26, 0.0  ;;  %v2505_v24 = vld [vmem:[#allocation5 + $0x360] ss:$8 sps:$4 sm:$0xff]   ;;  %v2508_v26 = vld [vmem:[#allocation5 + $0x370] ss:$8 sps:$4 sm:$0xff]  }
 0x214   :  { %v370_v32 = vmax.f32 %v358_v28, 0.0  ;;  %v2511_v27 = vld [vmem:[#allocation5 + $0x380] ss:$8 sps:$4 sm:$0xff]   ;;  %v2513_v28 = vld [vmem:[#allocation5 + $0x384] ss:$8 sps:$4 sm:$0xff]  }
 0x215   :  { %v374_v33 = vpack.c.bf16 %v372_v30, %v371_v29  ;;  %v2516_v29 = vld [vmem:[#allocation5 + $0x394] ss:$8 sps:$4 sm:$0xff]   ;;  %v2514_v30 = vld [vmem:[#allocation5 + $0x390] ss:$8 sps:$4 sm:$0xff]  }
 0x216   :  { %v373_v34 = vpack.c.bf16 %v370_v32, %v369_v31  ;;  %v2519_v31 = vld [vmem:[#allocation5 + $0x3a4] ss:$8 sps:$4 sm:$0xff]   ;;  %v2517_v32 = vld [vmem:[#allocation5 + $0x3a0] ss:$8 sps:$4 sm:$0xff]  }
 0x218   :  { %2350 = vmatprep.mubr.bf16.mxu0 %v373_v34  ;;  %v2520_v34 = vld [vmem:[#allocation5 + $0x3b0] ss:$8 sps:$4 sm:$0xff]  }
 0x219   :  { %2351 = vmatmul.mubr.bf16.vlgmr.msra.gmra.mrb[8].mxu0 %v374_v33  ;;  %v2522_v33 = vld [vmem:[#allocation5 + $0x3b4] ss:$8 sps:$4 sm:$0xff]  }
 0x21a   :  { %2375 = vmatpush3.bf16.msra.mxu0 %v2455_v6  ;;  %v2483_v6 = vld [vmem:[#allocation5 + $0x2e4] ss:$8 sps:$4 sm:$0xff]  }
 0x21b   :  { %2376 = vmatprep.subr.bf16.mxu0 %v2456_v38  ;;  %982 = vmatprep.subr.bf16.mxu1 %v2483_v6 }
 0x21c   :  { %983 = vmatpush1.bf16.msra.mxu1 %v2481_v7 }
 0x21d   :  { %984 = vmatprep.subr.bf16.mxu1 %v2486_v8 }
 0x21e   :  { %2377 = vmatpush3.bf16.msra.mxu0 %v2456_v38  ;;  %v2525_v38 = vld [vmem:[#allocation5 + $0x3c4] ss:$8 sps:$4 sm:$0xff]  }
 0x21f   :  { %2378 = vmatprep.subr.bf16.mxu0 %v2457_v39 }
 0x220   :  { %985 = vmatpush1.bf16.msra.mxu1 %v2484_v9 }
 0x221   :  { %986 = vmatprep.subr.bf16.mxu1 %v2489_v10 }
 0x222   :  { %2379 = vmatpush3.bf16.msra.mxu0 %v2457_v39  ;;  %v2523_v39 = vld [vmem:[#allocation5 + $0x3c0] ss:$8 sps:$4 sm:$0xff]  }
 0x223   :  { %2380 = vmatprep.subr.bf16.mxu0 %v2458_v40 }
 0x224   :  { %987 = vmatpush1.bf16.msra.mxu1 %v2487_v11 }
 0x225   :  { %988 = vmatprep.subr.bf16.mxu1 %v2492_v12 }
 0x226   :  { %2381 = vmatpush3.bf16.msra.mxu0 %v2458_v40  ;;  %v2528_v40 = vld [vmem:[#allocation5 + $0x3d4] ss:$8 sps:$4 sm:$0xff]  }
 0x227   :  { %2382 = vmatprep.subr.bf16.mxu0 %v2459_v41 }
 0x228   :  { %989 = vmatpush1.bf16.msra.mxu1 %v2490_v13 }
 0x229   :  { %990 = vmatprep.subr.bf16.mxu1 %v2495_v14  ;;  %v728_v14 = vsub.s32 4, %v2835_v35 }
 0x22a   :  { %2383 = vmatpush3.bf16.msra.mxu0 %v2459_v41  ;;  %v2526_v41 = vld [vmem:[#allocation5 + $0x3d0] ss:$8 sps:$4 sm:$0xff]  }
 0x22b   :  { %2384 = vmatprep.subr.bf16.mxu0 %v2460_v44 }
 0x22c   :  { %991 = vmatpush1.bf16.msra.mxu1 %v2493_v15 }
 0x22d   :  { %992 = vmatprep.subr.bf16.mxu1 %v2498_v16 }
 0x22e   :  { %v2372_v49 = vpop.f32.mrb[4].mxu1  ;;  %2385 = vmatpush3.bf16.msra.mxu0 %v2460_v44  ;;  %v2531_v44 = vld [vmem:[#allocation5 + $0x3e4] ss:$8 sps:$4 sm:$0xff]  }
 0x22f   :  { %v613_v51 = vadd.f32 %v2372_v49, %v521_v47  ;;  %v604_v54 = vpop.f32.mrb[5].mxu1  ;;  %2386 = vmatprep.subr.bf16.mxu0 %v2461_v48  ;;  %v2537_v49 = vld [vmem:[#allocation5 + $0x404] ss:$8 sps:$4 sm:$0xff]  }
 0x230   :  { %v605_v57 = vadd.f32 %v604_v54, %v521_v47  ;;  %v2373_v58 = vpop.f32.mrb[6].mxu1  ;;  %993 = vmatpush1.bf16.msra.mxu1 %v2496_v17  ;;  %v2540_v54 = vld [vmem:[#allocation5 + $0x414] ss:$8 sps:$4 sm:$0xff]  }
 0x231   :  { %v616_v59 = vadd.f32 %v2373_v58, %v521_v47  ;;  %v607_v60 = vpop.f32.mrb[7].mxu1  ;;  %v621_v62 = vmax.f32 %v613_v51, 0.0  ;;  %994 = vmatprep.subr.bf16.mxu1 %v2501_v18  ;;  %v2535_v51 = vld [vmem:[#allocation5 + $0x400] ss:$8 sps:$4 sm:$0xff]  }
 0x232   :  { %v608_v61 = vadd.f32 %v607_v60, %v521_v47  ;;  %2387 = vmatpush3.bf16.msra.mxu0 %v2461_v48  ;;  %v619_v0 = vmax.f32 %v605_v57, 0.0  ;;  %v2534_v47 = vld [vmem:[#allocation5 + $0x3f4] ss:$8 sps:$4 sm:$0xff]   ;;  %v2532_v48 = vld [vmem:[#allocation5 + $0x3f0] ss:$8 sps:$4 sm:$0xff]  }
 0x233   :  { %v622_v63 = vmax.f32 %v616_v59, 0.0  ;;  %2388 = vmatprep.subr.bf16.mxu0 %v2462_v56  ;;  %v2543_v57 = vld [vmem:[#allocation5 + $0x424] ss:$8 sps:$4 sm:$0xff]   ;;  %v2541_v58 = vld [vmem:[#allocation5 + $0x420] ss:$8 sps:$4 sm:$0xff]  }
 0x234   :  { %v620_v3 = vmax.f32 %v608_v61, 0.0  ;;  %995 = vmatpush1.bf16.msra.mxu1 %v2499_v20  ;;  %v2546_v59 = vld [vmem:[#allocation5 + $0x434] ss:$8 sps:$4 sm:$0xff]   ;;  %v2544_v60 = vld [vmem:[#allocation5 + $0x430] ss:$8 sps:$4 sm:$0xff]  }
 0x235   :  { %v624_v4 = vpack.c.bf16 %v622_v63, %v621_v62  ;;  %996 = vmatprep.subr.bf16.mxu1 %v2504_v21  ;;  %v2549_v61 = vld [vmem:[#allocation5 + $0x444] ss:$8 sps:$4 sm:$0xff]   ;;  %v2547_v62 = vld [vmem:[#allocation5 + $0x440] ss:$8 sps:$4 sm:$0xff]   ;;  %v2552_v63 = vld [vmem:[#allocation5 + $0x454] ss:$8 sps:$4 sm:$0xff]  }
 0x236   :  { %v623_v5 = vpack.c.bf16 %v620_v3, %v619_v0  ;;  %2389 = vmatpush3.bf16.msra.mxu0 %v2462_v56  ;;  %v2538_v56 = vld [vmem:[#allocation5 + $0x410] ss:$8 sps:$4 sm:$0xff]   ;;  %v478_v3 = vsub.s32 2, %v2835_v35 }
 0x237   :  { %1195 = vmatprep.subr.bf16.mxu0 %v2513_v28  ;;  %v2550_v0 = vld [vmem:[#allocation5 + $0x450] ss:$8 sps:$4 sm:$0xff]  }
 0x238   :  { %2390 = vmatprep.mubr.bf16.mxu0 %v623_v5  ;;  %997 = vmatpush1.bf16.msra.mxu1 %v2502_v22  ;;  %v479_v6 = vrot.slane %v2840_v37, %v478_v3  ;;  %v2592_v3 = vld [vmem:[#allocation5 + $0x530] ss:$8 sps:$4 sm:$0xff]  }
 0x239   :  { %2391 = vmatmul.mubr.bf16.vlgmr.msra.gmra.mrb[12].mxu0 %v624_v4  ;;  %998 = vmatprep.subr.bf16.mxu1 %v2507_v23 }
 0x23a   :  { %1196 = vmatpush1.bf16.msra.mxu0 %v2511_v27 }
 0x23b   :  { %1197 = vmatprep.subr.bf16.mxu0 %v2516_v29 }
 0x23c   :  { %999 = vmatpush1.bf16.msra.mxu1 %v2505_v24 }
 0x23d   :  { %1000 = vmatprep.subr.bf16.mxu1 %v2510_v25 }
 0x23e   :  { %1198 = vmatpush1.bf16.msra.mxu0 %v2514_v30  ;;  %v2555_v30 = vld [vmem:[#allocation5 + $0x464] ss:$8 sps:$4 sm:$0xff]  }
 0x23f   :  { %1199 = vmatprep.subr.bf16.mxu0 %v2519_v31  ;;  %v2558_v31 = vld [vmem:[#allocation5 + $0x474] ss:$8 sps:$4 sm:$0xff]  }
 0x240   :  { %1001 = vmatpush1.bf16.msra.mxu1 %v2508_v26 }
 0x242   :  { %1200 = vmatpush1.bf16.msra.mxu0 %v2517_v32  ;;  %v2556_v32 = vld [vmem:[#allocation5 + $0x470] ss:$8 sps:$4 sm:$0xff]  }
 0x243   :  { %1201 = vmatprep.subr.bf16.mxu0 %v2522_v33  ;;  %v2559_v33 = vld [vmem:[#allocation5 + $0x480] ss:$8 sps:$4 sm:$0xff]  }
 0x246   :  { %1202 = vmatpush1.bf16.msra.mxu0 %v2520_v34  ;;  %v2564_v34 = vld [vmem:[#allocation5 + $0x494] ss:$8 sps:$4 sm:$0xff]  }
 0x247   :  { %1203 = vmatprep.subr.bf16.mxu0 %v2525_v38  ;;  %v2562_v38 = vld [vmem:[#allocation5 + $0x490] ss:$8 sps:$4 sm:$0xff]  }
 0x24a   :  { %1204 = vmatpush1.bf16.msra.mxu0 %v2523_v39  ;;  %v2567_v39 = vld [vmem:[#allocation5 + $0x4a4] ss:$8 sps:$4 sm:$0xff]  }
 0x24b   :  { %1205 = vmatprep.subr.bf16.mxu0 %v2528_v40  ;;  %v2565_v40 = vld [vmem:[#allocation5 + $0x4a0] ss:$8 sps:$4 sm:$0xff]  }
 0x24e   :  { %1206 = vmatpush1.bf16.msra.mxu0 %v2526_v41  ;;  %v2570_v41 = vld [vmem:[#allocation5 + $0x4b4] ss:$8 sps:$4 sm:$0xff]  }
 0x24f   :  { %1207 = vmatprep.subr.bf16.mxu0 %v2531_v44  ;;  %v2568_v44 = vld [vmem:[#allocation5 + $0x4b0] ss:$8 sps:$4 sm:$0xff]  }
 0x252   :  { %1208 = vmatpush1.bf16.msra.mxu0 %v2529_v46  ;;  %v2573_v46 = vld [vmem:[#allocation5 + $0x4c4] ss:$8 sps:$4 sm:$0xff]  }
 0x253   :  { %1209 = vmatprep.subr.bf16.mxu0 %v2534_v47  ;;  %v2571_v47 = vld [vmem:[#allocation5 + $0x4c0] ss:$8 sps:$4 sm:$0xff]  }
 0x256   :  { %1210 = vmatpush1.bf16.msra.mxu0 %v2532_v48  ;;  %v2576_v48 = vld [vmem:[#allocation5 + $0x4d4] ss:$8 sps:$4 sm:$0xff]  }
 0x257   :  { %1211 = vmatprep.subr.bf16.mxu0 %v2537_v49  ;;  %v2574_v49 = vld [vmem:[#allocation5 + $0x4d0] ss:$8 sps:$4 sm:$0xff]  }
 0x25a   :  { %1212 = vmatpush1.bf16.msra.mxu0 %v2535_v51  ;;  %v2579_v51 = vld [vmem:[#allocation5 + $0x4e4] ss:$8 sps:$4 sm:$0xff]  }
 0x25b   :  { %1213 = vmatprep.subr.bf16.mxu0 %v2540_v54  ;;  %v2577_v54 = vld [vmem:[#allocation5 + $0x4e0] ss:$8 sps:$4 sm:$0xff]  }
 0x25e   :  { %1214 = vmatpush1.bf16.msra.mxu0 %v2538_v56  ;;  %v2582_v56 = vld [vmem:[#allocation5 + $0x4f4] ss:$8 sps:$4 sm:$0xff]  }
 0x25f   :  { %1215 = vmatprep.subr.bf16.mxu0 %v2543_v57  ;;  %v2580_v57 = vld [vmem:[#allocation5 + $0x4f0] ss:$8 sps:$4 sm:$0xff]  }
 0x262   :  { %1216 = vmatpush1.bf16.msra.mxu0 %v2541_v58  ;;  %v2585_v58 = vld [vmem:[#allocation5 + $0x504] ss:$8 sps:$4 sm:$0xff]  }
 0x263   :  { %1217 = vmatprep.subr.bf16.mxu0 %v2546_v59  ;;  %v2583_v59 = vld [vmem:[#allocation5 + $0x500] ss:$8 sps:$4 sm:$0xff]  }
 0x266   :  { %1218 = vmatpush1.bf16.msra.mxu0 %v2544_v60  ;;  %v2588_v60 = vld [vmem:[#allocation5 + $0x514] ss:$8 sps:$4 sm:$0xff]  }
 0x267   :  { %1219 = vmatprep.subr.bf16.mxu0 %v2549_v61  ;;  %v2586_v61 = vld [vmem:[#allocation5 + $0x510] ss:$8 sps:$4 sm:$0xff]  }
 0x26a   :  { %1220 = vmatpush1.bf16.msra.mxu0 %v2547_v62  ;;  %v2591_v62 = vld [vmem:[#allocation5 + $0x524] ss:$8 sps:$4 sm:$0xff]  }
 0x26b   :  { %1221 = vmatprep.subr.bf16.mxu0 %v2552_v63  ;;  %v2589_v63 = vld [vmem:[#allocation5 + $0x520] ss:$8 sps:$4 sm:$0xff]  }
 0x26e   :  { %1222 = vmatpush1.bf16.msra.mxu0 %v2550_v0  ;;  %v2594_v0 = vld [vmem:[#allocation5 + $0x534] ss:$8 sps:$4 sm:$0xff]  }
 0x26f   :  { %1223 = vmatprep.subr.bf16.mxu0 %v2555_v30 }
 0x2ec   :  { %v2352_v4 = vpop.f32.mrb[8].mxu0 }
 0x2ed   :  { %v457_v5 = vpop.f32.mrb[9].mxu0 }
 0x2ee   :  { %v472_v7 = vadd.f32 %v457_v5, %v2844_v42  ;;  %v2353_v8 = vpop.f32.mrb[10].mxu0  ;;  %v729_v42 = vrot.slane %v2840_v37, %v728_v14  ;;  %v2595_v5 = vld [vmem:[#allocation5 + $0x540] ss:$8 sps:$4 sm:$0xff]  }
 0x2ef   :  { %v460_v9 = vpop.f32.mrb[11].mxu0  ;;  %v475_v16 = vadd.f32 %v2353_v8, %v2858_v53  ;;  %v804_v8 = vsub.s32 5, %v2835_v35 }
 0x2f0   :  { %v473_v10 = vadd.f32 %v460_v9, %v2846_v43  ;;  %v2882_v11 = vadd.f32 %v479_v6, %v472_v7  ;;  %v474_v43 = vadd.f32 %v2352_v4, %v2856_v52  ;;  %v2597_v4 = vld [vmem:[#allocation5 + $0x544] ss:$8 sps:$4 sm:$0xff]   ;;  %v2598_v7 = vld [vmem:[#allocation5 + $0x550] ss:$8 sps:$4 sm:$0xff]  }
 0x2f1   :  { %v2894_v23 = vadd.f32 %v479_v6, %v475_v16  ;;  %v805_v9 = vrot.slane %v2840_v37, %v804_v8 }
 0x2f2   :  { %v2884_v12 = vadd.f32 %v479_v6, %v473_v10  ;;  %v2900_v26 = vadd.f32 %v479_v6, %v474_v43  ;;  %v2600_v6 = vld [vmem:[#allocation5 + $0x554] ss:$8 sps:$4 sm:$0xff]   ;;  %v809_v10 = vrot.slane %v2848_v45, %v804_v8  ;;  %v2633_v8 = vld [vmem:[#allocation5 + $0x604] ss:$8 sps:$4 sm:$0xff]  }
 0x2f4   :  { %v799_v13 = vpack.c.bf16 %v2884_v12, %v2882_v11 }
 0x2f6   :  { %1002 = vmatprep.mubr.bf16.mxu1 %v799_v13 }
 0x30c   :  { %v2392_v15 = vpop.f32.mrb[12].mxu0 }
 0x30d   :  { %v707_v17 = vpop.f32.mrb[13].mxu0  ;;  %v724_v52 = vadd.f32 %v2392_v15, %v2868_v2  ;;  %v2561_v2 = vld [vmem:[#allocation5 + $0x484] ss:$8 sps:$4 sm:$0xff]  }
 0x30e   :  { %v722_v18 = vadd.f32 %v707_v17, %v2860_v55  ;;  %v2393_v20 = vpop.f32.mrb[14].mxu0  ;;  %v801_v55 = vpack.c.bf16 %v2894_v23, %v2900_v26  ;;  %1508 = vmatprep.subr.bf16.mxu1 %v2561_v2 }
 0x30f   :  { %v710_v21 = vpop.f32.mrb[15].mxu0  ;;  %v725_v53 = vadd.f32 %v2393_v20, %v2866_v1  ;;  %v2910_v28 = vadd.f32 %v729_v42, %v724_v52  ;;  %v2553_v1 = vld [vmem:[#allocation5 + $0x460] ss:$8 sps:$4 sm:$0xff]  }
 0x310   :  { %v723_v22 = vadd.f32 %v710_v21, %v2854_v50  ;;  %v2896_v24 = vadd.f32 %v729_v42, %v722_v18  ;;  %1224 = vmatpush1.bf16.msra.mxu0 %v2553_v1 }
 0x311   :  { %v2908_v50 = vadd.f32 %v729_v42, %v725_v53  ;;  %1225 = vmatprep.subr.bf16.mxu0 %v2558_v31 }
 0x312   :  { %v2898_v25 = vadd.f32 %v729_v42, %v723_v22 }
 0x313   :  { %v800_v29 = vpack.c.bf16 %v2908_v50, %v2910_v28 }
 0x314   :  { %v798_v27 = vpack.c.bf16 %v2898_v25, %v2896_v24  ;;  %1226 = vmatpush1.bf16.msra.mxu0 %v2556_v32 }
 0x316   :  { %1003 = vmatmul.mubr.bf16.vlgmr.msra.gmra.mrb[8].mxu1 %v798_v27 }
 0x317   :  { %1012 = vmatprep.mubr.bf16.mxu1 %v801_v55  ;;  %1509 = vmatpush1.bf16.msra.mxu1 %v2559_v33 }
 0x318   :  { %1510 = vmatprep.subr.bf16.mxu1 %v2564_v34 }
 0x31b   :  { %1511 = vmatpush1.bf16.msra.mxu1 %v2562_v38 }
 0x31c   :  { %1512 = vmatprep.subr.bf16.mxu1 %v2567_v39 }
 0x31e   :  { %1013 = vmatmul.mubr.bf16.gmra.mrb[12].mxu1 %v800_v29 }
 0x31f   :  { %1513 = vmatpush1.bf16.msra.mxu1 %v2565_v40 }
 0x320   :  { %1514 = vmatprep.subr.bf16.mxu1 %v2570_v41 }
 0x323   :  { %1515 = vmatpush1.bf16.msra.mxu1 %v2568_v44 }
 0x324   :  { %1516 = vmatprep.subr.bf16.mxu1 %v2573_v46  ;;  %v2603_v46 = vld [vmem:[#allocation5 + $0x564] ss:$8 sps:$4 sm:$0xff]  }
 0x327   :  { %1517 = vmatpush1.bf16.msra.mxu1 %v2571_v47  ;;  %v2601_v47 = vld [vmem:[#allocation5 + $0x560] ss:$8 sps:$4 sm:$0xff]  }
 0x328   :  { %1518 = vmatprep.subr.bf16.mxu1 %v2576_v48  ;;  %v2606_v48 = vld [vmem:[#allocation5 + $0x574] ss:$8 sps:$4 sm:$0xff]  }
 0x32b   :  { %1519 = vmatpush1.bf16.msra.mxu1 %v2574_v49  ;;  %v2604_v49 = vld [vmem:[#allocation5 + $0x570] ss:$8 sps:$4 sm:$0xff]  }
 0x32c   :  { %1520 = vmatprep.subr.bf16.mxu1 %v2579_v51  ;;  %v2607_v51 = vld [vmem:[#allocation5 + $0x580] ss:$8 sps:$4 sm:$0xff]  }
 0x32f   :  { %1521 = vmatpush1.bf16.msra.mxu1 %v2577_v54  ;;  %v2609_v54 = vld [vmem:[#allocation5 + $0x584] ss:$8 sps:$4 sm:$0xff]  }
 0x330   :  { %1522 = vmatprep.subr.bf16.mxu1 %v2582_v56  ;;  %v2612_v56 = vld [vmem:[#allocation5 + $0x594] ss:$8 sps:$4 sm:$0xff]   ;;  %1733 = vmatprep.subr.bf16.mxu0 %v2609_v54 }
 0x333   :  { %1523 = vmatpush1.bf16.msra.mxu1 %v2580_v57  ;;  %v2610_v57 = vld [vmem:[#allocation5 + $0x590] ss:$8 sps:$4 sm:$0xff]  }
 0x334   :  { %1524 = vmatprep.subr.bf16.mxu1 %v2585_v58  ;;  %v2615_v58 = vld [vmem:[#allocation5 + $0x5a4] ss:$8 sps:$4 sm:$0xff]  }
 0x337   :  { %1525 = vmatpush1.bf16.msra.mxu1 %v2583_v59  ;;  %v2613_v59 = vld [vmem:[#allocation5 + $0x5a0] ss:$8 sps:$4 sm:$0xff]  }
 0x338   :  { %1526 = vmatprep.subr.bf16.mxu1 %v2588_v60  ;;  %v2618_v60 = vld [vmem:[#allocation5 + $0x5b4] ss:$8 sps:$4 sm:$0xff]  }
 0x33b   :  { %1527 = vmatpush1.bf16.msra.mxu1 %v2586_v61  ;;  %v2616_v61 = vld [vmem:[#allocation5 + $0x5b0] ss:$8 sps:$4 sm:$0xff]  }
 0x33c   :  { %1528 = vmatprep.subr.bf16.mxu1 %v2591_v62  ;;  %v2621_v62 = vld [vmem:[#allocation5 + $0x5c4] ss:$8 sps:$4 sm:$0xff]  }
 0x33f   :  { %1529 = vmatpush1.bf16.msra.mxu1 %v2589_v63  ;;  %v2619_v63 = vld [vmem:[#allocation5 + $0x5c0] ss:$8 sps:$4 sm:$0xff]  }
 0x340   :  { %1530 = vmatprep.subr.bf16.mxu1 %v2594_v0  ;;  %v2624_v0 = vld [vmem:[#allocation5 + $0x5d4] ss:$8 sps:$4 sm:$0xff]  }
 0x343   :  { %1531 = vmatpush1.bf16.msra.mxu1 %v2592_v3  ;;  %v2622_v3 = vld [vmem:[#allocation5 + $0x5d0] ss:$8 sps:$4 sm:$0xff]  }
 0x344   :  { %1532 = vmatprep.subr.bf16.mxu1 %v2597_v4  ;;  %v2627_v4 = vld [vmem:[#allocation5 + $0x5e4] ss:$8 sps:$4 sm:$0xff]  }
 0x347   :  { %1533 = vmatpush1.bf16.msra.mxu1 %v2595_v5  ;;  %v2625_v5 = vld [vmem:[#allocation5 + $0x5e0] ss:$8 sps:$4 sm:$0xff]  }
 0x348   :  { %1534 = vmatprep.subr.bf16.mxu1 %v2600_v6  ;;  %v2630_v6 = vld [vmem:[#allocation5 + $0x5f4] ss:$8 sps:$4 sm:$0xff]  }
 0x34b   :  { %1535 = vmatpush1.bf16.msra.mxu1 %v2598_v7  ;;  %v2628_v7 = vld [vmem:[#allocation5 + $0x5f0] ss:$8 sps:$4 sm:$0xff]  }
 0x34c   :  { %1536 = vmatprep.subr.bf16.mxu1 %v2603_v46 }
 0x34f   :  { %1537 = vmatpush1.bf16.msra.mxu1 %v2601_v47 }
 0x350   :  { %1538 = vmatprep.subr.bf16.mxu1 %v2606_v48 }
 0x353   :  { %1539 = vmatpush1.bf16.msra.mxu1 %v2604_v49 }
 0x3e9   :  { %v1004_v13 = vpop.f32.mrb[8].mxu1 }
 0x3ea   :  { %v1005_v14 = vadd.f32 %v1004_v13, %v805_v9  ;;  %v1006_v15 = vpop.f32.mrb[9].mxu1  ;;  %v2634_v13 = vld [vmem:[#allocation5 + $0x610] ss:$8 sps:$4 sm:$0xff]  }
 0x3eb   :  { %v1007_v16 = vadd.f32 %v1006_v15, %v809_v10  ;;  %v1008_v17 = vpop.f32.mrb[10].mxu1  ;;  %v2637_v15 = vld [vmem:[#allocation5 + $0x620] ss:$8 sps:$4 sm:$0xff]  }
 0x3ec   :  { %v1009_v42 = vadd.f32 %v1008_v17, %v805_v9  ;;  %v1010_v18 = vpop.f32.mrb[11].mxu1  ;;  %v1023_v43 = vmax.f32 %v1005_v14, 0.0  ;;  %v2639_v14 = vld [vmem:[#allocation5 + $0x624] ss:$8 sps:$4 sm:$0xff]   ;;  %v2640_v17 = vld [vmem:[#allocation5 + $0x630] ss:$8 sps:$4 sm:$0xff]  }
 0x3ed   :  { %v1011_v20 = vadd.f32 %v1010_v18, %v809_v10  ;;  %v1024_v22 = vmax.f32 %v1007_v16, 0.0  ;;  %v2642_v16 = vld [vmem:[#allocation5 + $0x634] ss:$8 sps:$4 sm:$0xff]   ;;  %v2643_v18 = vld [vmem:[#allocation5 + $0x640] ss:$8 sps:$4 sm:$0xff]  }
 0x3ee   :  { %v1025_v21 = vmax.f32 %v1009_v42, 0.0  ;;  %v2645_v42 = vld [vmem:[#allocation5 + $0x644] ss:$8 sps:$4 sm:$0xff]  }
 0x3ef   :  { %v1026_v53 = vmax.f32 %v1011_v20, 0.0  ;;  %v2648_v20 = vld [vmem:[#allocation5 + $0x654] ss:$8 sps:$4 sm:$0xff]  }
 0x3f0   :  { %v1031_v27 = vpack.c.bf16 %v1025_v21, %v1023_v43  ;;  %v2646_v43 = vld [vmem:[#allocation5 + $0x650] ss:$8 sps:$4 sm:$0xff]   ;;  %v1258_v21 = vsub.s32 6, %v2835_v35 }
 0x3f1   :  { %v1032_v55 = vpack.c.bf16 %v1026_v53, %v1024_v22  ;;  %v1014_v52 = vpop.f32.mrb[12].mxu1 }
 0x3f2   :  { %v1015_v29 = vadd.f32 %v1014_v52, %v805_v9  ;;  %v1016_v30 = vpop.f32.mrb[13].mxu1 }
 0x3f3   :  { %v1017_v1 = vadd.f32 %v1016_v30, %v809_v10  ;;  %v1018_v31 = vpop.f32.mrb[14].mxu1  ;;  %1227 = vmatprep.mubr.bf16.mxu0 %v1032_v55  ;;  %v1263_v55 = vrot.slane %v2848_v45, %v1258_v21  ;;  %v1259_v30 = vrot.slane %v2840_v37, %v1258_v21 }
 0x3f4   :  { %v1019_v32 = vadd.f32 %v1018_v31, %v805_v9  ;;  %v1020_v33 = vpop.f32.mrb[15].mxu1  ;;  %1228 = vmatmul.mubr.bf16.vlgmr.msra.gmra.mrb[16].mxu0 %v1031_v27  ;;  %v1027_v34 = vmax.f32 %v1015_v29, 0.0  ;;  %v2631_v9 = vld [vmem:[#allocation5 + $0x600] ss:$8 sps:$4 sm:$0xff]  }
 0x3f5   :  { %v1021_v2 = vadd.f32 %v1020_v33, %v809_v10  ;;  %v1028_v39 = vmax.f32 %v1017_v1, 0.0  ;;  %1734 = vmatpush1.bf16.msra.mxu0 %v2607_v51  ;;  %v2636_v10 = vld [vmem:[#allocation5 + $0x614] ss:$8 sps:$4 sm:$0xff]  }
 0x3f6   :  { %v1029_v38 = vmax.f32 %v1019_v32, 0.0  ;;  %1735 = vmatprep.subr.bf16.mxu0 %v2612_v56  ;;  %v2649_v56 = vld [vmem:[#allocation5 + $0x660] ss:$8 sps:$4 sm:$0xff]  }
 0x3f7   :  { %v1030_v40 = vmax.f32 %v1021_v2, 0.0 }
 0x3f8   :  { %v1033_v41 = vpack.c.bf16 %v1029_v38, %v1027_v34 }
 0x3f9   :  { %v1034_v44 = vpack.c.bf16 %v1030_v40, %v1028_v39  ;;  %1736 = vmatpush1.bf16.msra.mxu0 %v2610_v57  ;;  %v2652_v57 = vld [vmem:[#allocation5 + $0x670] ss:$8 sps:$4 sm:$0xff]  }
 0x3fa   :  { %1737 = vmatprep.subr.bf16.mxu0 %v2615_v58  ;;  %v2655_v58 = vld [vmem:[#allocation5 + $0x700] ss:$8 sps:$4 sm:$0xff]  }
 0x3fb   :  { %1237 = vmatprep.mubr.bf16.mxu0 %v1034_v44  ;;  %2286 = vmatprep.subr.bf16.mxu1 %v2655_v58 }
 0x3fc   :  { %1238 = vmatmul.mubr.bf16.gmra.mrb[20].mxu0 %v1033_v41 }
 0x3fd   :  { %1738 = vmatpush1.bf16.msra.mxu0 %v2613_v59  ;;  %v2656_v59 = vld [vmem:[#allocation5 + $0x680] ss:$8 sps:$4 sm:$0xff]  }
 0x3fe   :  { %1739 = vmatprep.subr.bf16.mxu0 %v2618_v60  ;;  %v2657_v60 = vld [vmem:[#allocation5 + $0x710] ss:$8 sps:$4 sm:$0xff]  }
 0x401   :  { %1740 = vmatpush1.bf16.msra.mxu0 %v2616_v61  ;;  %v2658_v61 = vld [vmem:[#allocation5 + $0x690] ss:$8 sps:$4 sm:$0xff]  }
 0x402   :  { %1741 = vmatprep.subr.bf16.mxu0 %v2621_v62  ;;  %v2659_v62 = vld [vmem:[#allocation5 + $0x720] ss:$8 sps:$4 sm:$0xff]  }
 0x405   :  { %1742 = vmatpush1.bf16.msra.mxu0 %v2619_v63  ;;  %v2660_v63 = vld [vmem:[#allocation5 + $0x6a0] ss:$8 sps:$4 sm:$0xff]  }
 0x406   :  { %1743 = vmatprep.subr.bf16.mxu0 %v2624_v0  ;;  %v2661_v0 = vld [vmem:[#allocation5 + $0x730] ss:$8 sps:$4 sm:$0xff]  }
 0x409   :  { %1744 = vmatpush1.bf16.msra.mxu0 %v2622_v3  ;;  %v2662_v3 = vld [vmem:[#allocation5 + $0x6b0] ss:$8 sps:$4 sm:$0xff]  }
 0x40a   :  { %1745 = vmatprep.subr.bf16.mxu0 %v2627_v4  ;;  %v2663_v4 = vld [vmem:[#allocation5 + $0x740] ss:$8 sps:$4 sm:$0xff]  }
 0x40d   :  { %1746 = vmatpush1.bf16.msra.mxu0 %v2625_v5  ;;  %v2664_v5 = vld [vmem:[#allocation5 + $0x6c0] ss:$8 sps:$4 sm:$0xff]  }
 0x40e   :  { %1747 = vmatprep.subr.bf16.mxu0 %v2630_v6  ;;  %v2665_v6 = vld [vmem:[#allocation5 + $0x750] ss:$8 sps:$4 sm:$0xff]  }
 0x411   :  { %1748 = vmatpush1.bf16.msra.mxu0 %v2628_v7  ;;  %v1342_v7 = vsub.s32 7, %v2835_v35 }
 0x412   :  { %1749 = vmatprep.subr.bf16.mxu0 %v2633_v8 }
 0x413   :  { %v1343_v8 = vrot.slane %v2840_v37, %v1342_v7 }
 0x415   :  { %1750 = vmatpush1.bf16.msra.mxu0 %v2631_v9  ;;  %v1347_v9 = vrot.slane %v2848_v45, %v1342_v7 }
 0x416   :  { %1751 = vmatprep.subr.bf16.mxu0 %v2636_v10 }
 0x419   :  { %1752 = vmatpush1.bf16.msra.mxu0 %v2634_v13 }
 0x41a   :  { %1753 = vmatprep.subr.bf16.mxu0 %v2639_v14 }
 0x41d   :  { %1754 = vmatpush1.bf16.msra.mxu0 %v2637_v15 }
 0x41e   :  { %1755 = vmatprep.subr.bf16.mxu0 %v2642_v16 }
 0x421   :  { %1756 = vmatpush1.bf16.msra.mxu0 %v2640_v17 }
 0x422   :  { %1757 = vmatprep.subr.bf16.mxu0 %v2645_v42 }
 0x425   :  { %1758 = vmatpush1.bf16.msra.mxu0 %v2643_v18 }
 0x426   :  { %1759 = vmatprep.subr.bf16.mxu0 %v2648_v20 }
 0x429   :  { %1760 = vmatpush1.bf16.msra.mxu0 %v2646_v43 }
 0x4c7   :  { %v1229_v22 = vpop.f32.mrb[16].mxu0 }
 0x4c8   :  { %v1231_v53 = vpop.f32.mrb[17].mxu0  ;;  %v1248_v29 = vadd.f32 %v1229_v22, %v2896_v24 }
 0x4c9   :  { %v1249_v27 = vadd.f32 %v1231_v53, %v2882_v11  ;;  %v1233_v52 = vpop.f32.mrb[18].mxu0 }
 0x4ca   :  { %v1250_v1 = vadd.f32 %v1233_v52, %v2898_v25  ;;  %v1235_v31 = vpop.f32.mrb[19].mxu0  ;;  %v2930_v38 = vadd.f32 %v1259_v30, %v1248_v29 }
 0x4cb   :  { %v1251_v32 = vadd.f32 %v1235_v31, %v2884_v12  ;;  %v2926_v2 = vadd.f32 %v1263_v55, %v1249_v27 }
 0x4cc   :  { %v2924_v33 = vadd.f32 %v1259_v30, %v1250_v1 }
 0x4cd   :  { %v2928_v34 = vadd.f32 %v1263_v55, %v1251_v32 }
 0x4ce   :  { %v1336_v24 = vpack.c.bf16 %v2924_v33, %v2930_v38 }
 0x4cf   :  { %v1239_v11 = vpop.f32.mrb[20].mxu0  ;;  %v1337_v39 = vpack.c.bf16 %v2928_v34, %v2926_v2 }
 0x4d0   :  { %v1241_v40 = vpop.f32.mrb[21].mxu0  ;;  %v1252_v12 = vadd.f32 %v1239_v11, %v2910_v28 }
 0x4d1   :  { %v1253_v25 = vadd.f32 %v1241_v40, %v2900_v26  ;;  %v1243_v41 = vpop.f32.mrb[22].mxu0  ;;  %1540 = vmatprep.mubr.bf16.mxu1 %v1337_v39 }
 0x4d2   :  { %v1254_v44 = vadd.f32 %v1243_v41, %v2908_v50  ;;  %v1245_v46 = vpop.f32.mrb[23].mxu0  ;;  %1541 = vmatmul.mubr.bf16.vlgmr.msra.gmra.mrb[16].mxu1 %v1336_v24  ;;  %v2946_v54 = vadd.f32 %v1259_v30, %v1252_v12  ;;  %v2651_v50 = vld [vmem:[#allocation5 + $0x664] ss:$8 sps:$4 sm:$0xff]   ;;  %v2666_v41 = vld [vmem:[#allocation5 + $0x6d0] ss:$8 sps:$4 sm:$0xff]  }
 0x4d3   :  { %v1255_v47 = vadd.f32 %v1245_v46, %v2894_v23  ;;  %v2942_v49 = vadd.f32 %v1263_v55, %v1253_v25  ;;  %1761 = vmatprep.subr.bf16.mxu0 %v2651_v50  ;;  %v2654_v23 = vld [vmem:[#allocation5 + $0x674] ss:$8 sps:$4 sm:$0xff]   ;;  %2287 = vmatpush3.bf16.msra.mxu1 %v2656_v59  ;;  %v2667_v12 = vld [vmem:[#allocation5 + $0x760] ss:$8 sps:$4 sm:$0xff]   ;;  %v2669_v46 = vld [vmem:[#allocation5 + $0x770] ss:$8 sps:$4 sm:$0xff]  }
 0x4d4   :  { %v2940_v48 = vadd.f32 %v1259_v30, %v1254_v44  ;;  %1762 = vmatpush1.bf16.msra.mxu0 %v2649_v56  ;;  %2288 = vmatprep.subr.bf16.mxu1 %v2657_v60  ;;  %v2668_v44 = vld [vmem:[#allocation5 + $0x6e0] ss:$8 sps:$4 sm:$0xff]  }
 0x4d5   :  { %v2944_v51 = vadd.f32 %v1263_v55, %v1255_v47  ;;  %1763 = vmatprep.subr.bf16.mxu0 %v2654_v23  ;;  %v2670_v47 = vld [vmem:[#allocation5 + $0x6f0] ss:$8 sps:$4 sm:$0xff]  }
 0x4d6   :  { %v1338_v28 = vpack.c.bf16 %v2940_v48, %v2946_v54 }
 0x4d7   :  { %v1339_v26 = vpack.c.bf16 %v2944_v51, %v2942_v49  ;;  %2289 = vmatpush3.bf16.msra.mxu1 %v2658_v61 }
 0x4d8   :  { %1764 = vmatpush1.bf16.msra.mxu0 %v2652_v57  ;;  %2290 = vmatprep.subr.bf16.mxu1 %v2659_v62 }
 0x4d9   :  { %1550 = vmatprep.mubr.bf16.mxu1 %v1339_v26  ;;  %v59_v26 = vld [vmem:[#allocation7 + $0x10] sm:$0x3] }
 0x4da   :  { %1551 = vmatmul.mubr.bf16.gmra.mrb[20].mxu1 %v1338_v28  ;;  %v60_v28 = vld [vmem:[#allocation7 + $0x18] sm:$0x3]  ;;  %v1797_v23 = vrot.slane %v59_v26, %v2838_v36 }
 0x4db   :  { %2291 = vmatpush3.bf16.msra.mxu1 %v2660_v63  ;;  %v1801_v59 = vrot.slane %v60_v28, %v2838_v36 }
 0x4dc   :  { %2292 = vmatprep.subr.bf16.mxu1 %v2661_v0 }
 0x4df   :  { %2293 = vmatpush3.bf16.msra.mxu1 %v2662_v3 }
 0x4e0   :  { %2294 = vmatprep.subr.bf16.mxu1 %v2663_v4 }
 0x4e3   :  { %2295 = vmatpush3.bf16.msra.mxu1 %v2664_v5 }
 0x4e4   :  { %2296 = vmatprep.subr.bf16.mxu1 %v2665_v6 }
 0x4e7   :  { %2297 = vmatpush3.bf16.msra.mxu1 %v2666_v41 }
 0x4e8   :  { %2298 = vmatprep.subr.bf16.mxu1 %v2667_v12 }
 0x4eb   :  { %2299 = vmatpush3.bf16.msra.mxu1 %v2668_v44 }
 0x4ec   :  { %2300 = vmatprep.subr.bf16.mxu1 %v2669_v46 }
 0x4ef   :  { %2301 = vmatpush3.bf16.msra.mxu1 %v2670_v47 }
 0x5a5   :  { %v1542_v10 = vpop.f32.mrb[16].mxu1 }
 0x5a6   :  { %v1543_v13 = vadd.f32 %v1542_v10, %v1343_v8  ;;  %v1544_v14 = vpop.f32.mrb[17].mxu1 }
 0x5a7   :  { %v1545_v15 = vadd.f32 %v1544_v14, %v1347_v9  ;;  %v1546_v16 = vpop.f32.mrb[18].mxu1 }
 0x5a8   :  { %v1547_v17 = vadd.f32 %v1546_v16, %v1343_v8  ;;  %v1548_v42 = vpop.f32.mrb[19].mxu1  ;;  %v1561_v20 = vmax.f32 %v1543_v13, 0.0 }
 0x5a9   :  { %v1549_v18 = vadd.f32 %v1548_v42, %v1347_v9  ;;  %v1562_v21 = vmax.f32 %v1545_v15, 0.0 }
 0x5aa   :  { %v1563_v43 = vmax.f32 %v1547_v17, 0.0 }
 0x5ab   :  { %v1564_v22 = vmax.f32 %v1549_v18, 0.0 }
 0x5ac   :  { %v1569_v53 = vpack.c.bf16 %v1563_v43, %v1561_v20 }
 0x5ad   :  { %v1570_v27 = vpack.c.bf16 %v1564_v22, %v1562_v21  ;;  %v1552_v55 = vpop.f32.mrb[20].mxu1 }
 0x5ae   :  { %v1553_v52 = vadd.f32 %v1552_v55, %v1343_v8  ;;  %v1554_v29 = vpop.f32.mrb[21].mxu1 }
 0x5af   :  { %v1555_v37 = vadd.f32 %v1554_v29, %v1347_v9  ;;  %v1556_v30 = vpop.f32.mrb[22].mxu1  ;;  %1765 = vmatprep.mubr.bf16.mxu0 %v1570_v27 }
 0x5b0   :  { %v1557_v45 = vadd.f32 %v1556_v30, %v1343_v8  ;;  %v1558_v1 = vpop.f32.mrb[23].mxu1  ;;  %1766 = vmatmul.mubr.bf16.vlgmr.msra.gmra.mrb[24].mxu0 %v1569_v53  ;;  %v1565_v32 = vmax.f32 %v1553_v52, 0.0 }
 0x5b1   :  { %v1559_v31 = vadd.f32 %v1558_v1, %v1347_v9  ;;  %v1566_v39 = vmax.f32 %v1555_v37, 0.0 }
 0x5b2   :  { %v1567_v11 = vmax.f32 %v1557_v45, 0.0 }
 0x5b3   :  { %v1568_v24 = vmax.f32 %v1559_v31, 0.0 }
 0x5b4   :  { %v1571_v40 = vpack.c.bf16 %v1567_v11, %v1565_v32 }
 0x5b5   :  { %v1572_v25 = vpack.c.bf16 %v1568_v24, %v1566_v39 }
 0x5b7   :  { %1775 = vmatprep.mubr.bf16.mxu0 %v1572_v25 }
 0x5b8   :  { %1776 = vmatmul.mubr.bf16.gmra.mrb[28].mxu0 %v1571_v40 }
 0x683   :  { %v1767_v50 = vpop.f32.mrb[24].mxu0 }
 0x684   :  { %v1786_v56 = vadd.f32 %v1767_v50, %v2930_v38  ;;  %v1769_v57 = vpop.f32.mrb[25].mxu0 }
 0x685   :  { %v1787_v58 = vadd.f32 %v1769_v57, %v2926_v2  ;;  %v1771_v60 = vpop.f32.mrb[26].mxu0 }
 0x686   :  { %v1788_v61 = vadd.f32 %v1771_v60, %v2924_v33  ;;  %v1773_v62 = vpop.f32.mrb[27].mxu0  ;;  %v1802_v0 = vadd.f32 %v1797_v23, %v1786_v56 }
 0x687   :  { %v1789_v63 = vadd.f32 %v1773_v62, %v2928_v34  ;;  %v1803_v4 = vadd.f32 %v1801_v59, %v1787_v58 }
 0x688   :  { %v1804_v3 = vadd.f32 %v1797_v23, %v1788_v61 }
 0x689   :  { %v1805_v5 = vadd.f32 %v1801_v59, %v1789_v63 }
 0x68a   :  { %v1842_v6 = vpack.c.bf16 %v1804_v3, %v1802_v0 }
 0x68b   :  { %v1777_v7 = vpop.f32.mrb[28].mxu0  ;;  %v1843_v38 = vpack.c.bf16 %v1805_v5, %v1803_v4 }
 0x68c   :  { %v1790_v8 = vadd.f32 %v1777_v7, %v2946_v54  ;;  %v1779_v9 = vpop.f32.mrb[29].mxu0 }
 0x68d   :  { %v1791_v2 = vadd.f32 %v1779_v9, %v2942_v49  ;;  %v1781_v10 = vpop.f32.mrb[30].mxu0  ;;  %1978 = vmatprep.mubr.bf16.mxu1 %v1843_v38  ;;  %v1849_v49 = vrot.slane %v59_v26, %v270_v19 }
 0x68e   :  { %v1792_v36 = vadd.f32 %v1781_v10, %v2940_v48  ;;  %v1783_v33 = vpop.f32.mrb[31].mxu0  ;;  %1979 = vmatmul.mubr.bf16.vlgmr.msra.gmra.mrb[24].mxu1 %v1842_v6  ;;  %v1806_v13 = vadd.f32 %v1797_v23, %v1790_v8 }
 0x68f   :  { %v1793_v34 = vadd.f32 %v1783_v33, %v2944_v51  ;;  %v1807_v15 = vadd.f32 %v1801_v59, %v1791_v2 }
 0x690   :  { %v1808_v14 = vadd.f32 %v1797_v23, %v1792_v36 }
 0x691   :  { %v1809_v16 = vadd.f32 %v1801_v59, %v1793_v34 }
 0x692   :  { %v1844_v17 = vpack.c.bf16 %v1808_v14, %v1806_v13 }
 0x693   :  { %v1845_v42 = vpack.c.bf16 %v1809_v16, %v1807_v15 }
 0x695   :  { %1986 = vmatprep.mubr.bf16.mxu1 %v1845_v42 }
 0x696   :  { %1987 = vmatmul.mubr.bf16.gmra.mrb[28].mxu1 %v1844_v17 }
 0x761   :  { %v2302_v54 = vpop.f32.mrb[24].mxu1 }
 0x762   :  { %v2303_v18 = vpop.f32.mrb[25].mxu1 }
 0x763   :  { %v2304_v20 = vadd.f32 %v2303_v18, %v2302_v54  ;;  %v2305_v43 = vpop.f32.mrb[26].mxu1 }
 0x764   :  { %v2306_v48 = vpop.f32.mrb[27].mxu1 }
 0x765   :  { %v2307_v21 = vadd.f32 %v2306_v48, %v2305_v43  ;;  %v1981_v22 = vadd.f32 %v2304_v20, %v1849_v49 }
 0x767   :  { %v1984_v53 = vadd.f32 %v2307_v21, %v1849_v49 }
 0x769   :  { %v2238_v51 = vpack.c.bf16 %v1984_v53, %v1981_v22  ;;  %v2308_v27 = vpop.f32.mrb[28].mxu1 }
 0x76a   :  { %v2309_v55 = vpop.f32.mrb[29].mxu1 }
 0x76b   :  { %2239 = vst [vmem:[#allocation8] sm:$0xff] %v2238_v51   ;;  %v2310_v52 = vadd.f32 %v2309_v55, %v2308_v27  ;;  %v2311_v29 = vpop.f32.mrb[30].mxu1 }
 0x76c   :  { %v2312_v37 = vpop.f32.mrb[31].mxu1 }
 0x76d   :  { %v2313_v30 = vadd.f32 %v2312_v37, %v2311_v29  ;;  %v1989_v45 = vadd.f32 %v2310_v52, %v1849_v49 }
 0x76f   :  { %v1992_v1 = vadd.f32 %v2313_v30, %v1849_v49 }
 0x771   :  { %v2243_v35 = vpack.c.bf16 %v1992_v1, %v1989_v45 }
 0x773   :  { %2245 = vst [vmem:[#allocation8 + $0x8] sm:$0xff] %v2243_v35  }
 0x774   :  { %2748 = shalt.err (!%p2745_p0)
}
 0x775   :  { %s2749_s29 = scalar_lea.hbm %s2985_s3, 256 }
 0x776   :  { %p2750_p1 = scmp.ne.s32.totalorder %s2985_s3, %s2749_s29  ;;  %p2753_p2 = scmp.lt.u32.totalorder %s2749_s29, %s2985_s3 }
 0x778   :  { %p2755_p3 = pnand %p2753_p2, %p2750_p1 }
 0x77a   :  { %2758 = shalt.err (!%p2755_p3)
}
 0x77b   :  { %2026 = dma.vmem_to_hbm [thread:$0]  %s2021_s25, 256, %s2985_s3, [#allocation4], %s2769_s1, %s2769_s1, %s2770_s9  }
 0x77c   :  { %2763 = dma.done.wait [#allocation4], 256  }
 0x77d   :  { %2764 = vsyncadd [#allocation4], 4294967040 }
 0x77e   :  { %2030 = vsyncpa [#allocation3], 1 }
 0x77f   :  { %2031 = vsyncpa [#allocation6], 1 }
 0x780   :  { %2032 = vsyncpa [#allocation4], 1 }

</bundles_post_ra>
